<compile_context>
chip_gen: v6e
topology: v6e:2x2x1
jax: 0.10.0
libtpu: 0.0.40
codegen_flags: <defaults>
</compile_context>

<pallas_src>
import math

import jax
import jax.numpy as jnp
from jax.experimental import pallas as pl
from jax.experimental.pallas import tpu as pltpu

# ---------------- model hyper-parameters (small, synthetic) ----------------
B = 4        # batch
S = 8        # sequence length
H = 32       # hidden size
F = 64       # FFN intermediate size
V = 64       # vocab size
L = 8        # num_labels (len(all_labels))
LN_EPS = 1e-12
IGNORE_INDEX = -100

BS = B * S                     # 32 — flattened (batch, seq) rows
LPAD = 128                     # lane-dense padded label dim

# weight-slab column layout (rows [0:H)):  [ wq | wk | wv | wo | wc(pad->128) | w1 | 0pad ]
QKV_END = 3 * H                # 96
WO_END = 4 * H                 # 128
WC_OFF = WO_END                # 128
WC_END = WC_OFF + LPAD         # 256
W1_OFF = WC_END                # 256
W1_END = W1_OFF + F            # 320
WTOT = 384                     # padded to a multiple of 128
WROWS = H + F                  # 96: rows [0:H) = H-input weights, rows [H:H+F) = w2 (cols [0:H))

# bias-slab row layout (each row is 128 lanes wide):
ROW_QKV, ROW_BO, ROW_LN1G, ROW_LN1B = 0, 1, 2, 3
ROW_B1, ROW_B2, ROW_LN2G, ROW_LN2B, ROW_BC = 4, 5, 6, 7, 8
BROWS = 16                     # padded row count (multiple of 8)


# ------------------------------ Pallas kernel ------------------------------
def double_tok_cls_kernel(onehot_ref, bias_ref, pos_ref, wemb_ref,
                          wslab_ref, bslab_ref, out_ref):
    """Both models over the whole (flattened) batch in a single grid step.

    onehot_ref : (BS, V)          bf16  one-hot token ids (shared by both models)
    bias_ref   : (BS, BS)         f32   additive attention bias (block-diag + pad mask)
    pos_ref    : (2, BS, H)       f32   pre-tiled positional embeddings
    wemb_ref   : (2, V, H)        bf16  word-embedding tables
    wslab_ref  : (2, WROWS, WTOT) bf16  packed weights [wq|wk|wv|wo|wc_pad|w1|0 ; w2|0]
    bslab_ref  : (2, BROWS, 128)  f32   packed biases / LayerNorm params
    out_ref    : (2, BS, 128)     f32   per-token logits, lane-dense (L padded to 128)
    """
    onehot = onehot_ref[...]                   # (BS, V)  bf16
    attn_bias = bias_ref[...]                  # (BS, BS) f32

    def layernorm(h, gamma, beta):
        # one-pass: var = E[h^2] - mean^2
        mu = jnp.mean(h, axis=-1, keepdims=True)
        m2 = jnp.mean(h * h, axis=-1, keepdims=True)
        var = m2 - mu * mu
        return (h - mu) * jax.lax.rsqrt(var + LN_EPS) * gamma + beta

    # Unrolled model loop: the two chains are independent, Mosaic interleaves
    # them to fill MXU / EUP / XLU bubbles within the single grid step.
    for m in range(2):
        w = wslab_ref[m]                       # (WROWS, WTOT) bf16
        b = bslab_ref[m]                       # (BROWS, 128)  f32

        # ---- embedding: one-hot matmul on the MXU + pre-tiled position emb ----
        x = jnp.dot(onehot, wemb_ref[m],
                    preferred_element_type=jnp.float32) + pos_ref[m]   # (BS, H) f32
        x_bf = x.astype(jnp.bfloat16)

        # ---- fused Q/K/V projection (1/sqrt(H) folded into wq/bq at pack time) ----
        qkv = jnp.dot(x_bf, w[0:H, 0:QKV_END],
                      preferred_element_type=jnp.float32) + b[ROW_QKV:ROW_QKV + 1,
                                                              0:QKV_END]
        q = qkv[:, 0:H]
        k = qkv[:, H:2 * H]
        v = qkv[:, 2 * H:3 * H]

        # ---- whole-batch attention; block-diagonal additive bias prevents
        #      cross-row attention and masks padded keys ----
        scores = jax.lax.dot_general(
            q.astype(jnp.bfloat16), k.astype(jnp.bfloat16),
            (((1,), (1,)), ((), ())),
            preferred_element_type=jnp.float32)                        # (BS, BS)
        scores = scores + attn_bias
        scores = scores - jnp.max(scores, axis=-1, keepdims=True)
        p = jnp.exp(scores)
        p = p * pl.reciprocal(jnp.sum(p, axis=-1, keepdims=True), approx=True)

        ctx = jnp.dot(p.astype(jnp.bfloat16), v.astype(jnp.bfloat16),
                      preferred_element_type=jnp.float32)              # (BS, H)
        attn_out = jnp.dot(ctx.astype(jnp.bfloat16), w[0:H, QKV_END:WO_END],
                           preferred_element_type=jnp.float32) + b[ROW_BO:ROW_BO + 1,
                                                                   0:H]
        h1 = layernorm(x + attn_out,
                       b[ROW_LN1G:ROW_LN1G + 1, 0:H],
                       b[ROW_LN1B:ROW_LN1B + 1, 0:H])

        # ---- feed-forward (w2 lives in rows [H:H+F) of the same weight slab) ----
        ff = jnp.dot(h1.astype(jnp.bfloat16), w[0:H, W1_OFF:W1_END],
                     preferred_element_type=jnp.float32) + b[ROW_B1:ROW_B1 + 1, 0:F]
        # TODO(synk): HF BERT's default GELU is the exact erf form; tanh approx used here.
        ff = jax.nn.gelu(ff, approximate=True)
        ff = jnp.dot(ff.astype(jnp.bfloat16), w[H:H + F, 0:H],
                     preferred_element_type=jnp.float32) + b[ROW_B2:ROW_B2 + 1, 0:H]
        h2 = layernorm(h1 + ff,
                       b[ROW_LN2G:ROW_LN2G + 1, 0:H],
                       b[ROW_LN2B:ROW_LN2B + 1, 0:H])

        # ---- token classification head: lane-dense 128-wide output ----
        logits = jnp.dot(h2.astype(jnp.bfloat16), w[0:H, WC_OFF:WC_END],
                         preferred_element_type=jnp.float32) + b[ROW_BC:ROW_BC + 1, :]
        out_ref[m] = logits


def run_double_token_classifier(onehot, attn_bias, pos, wemb, wslab, bslab):
    """Returns (2, BS, 128) padded logits for both models in one call."""
    return pl.pallas_call(
        double_tok_cls_kernel,
        out_shape=jax.ShapeDtypeStruct((2, BS, LPAD), jnp.float32),
        grid=(1,),
        in_specs=[
            pl.BlockSpec((BS, V), lambda i: (0, 0)),                 # one-hot ids
            pl.BlockSpec((BS, BS), lambda i: (0, 0)),                # attention bias
            pl.BlockSpec((2, BS, H), lambda i: (0, 0, 0)),           # tiled pos-emb
            pl.BlockSpec((2, V, H), lambda i: (0, 0, 0)),            # word-emb tables
            pl.BlockSpec((2, WROWS, WTOT), lambda i: (0, 0, 0)),     # packed weights
            pl.BlockSpec((2, BROWS, LPAD), lambda i: (0, 0, 0)),     # packed biases
        ],
        out_specs=pl.BlockSpec((2, BS, LPAD), lambda i: (0, 0, 0)),
        compiler_params=pltpu.CompilerParams(
            dimension_semantics=("arbitrary",)),
    )(onehot, attn_bias, pos, wemb, wslab, bslab)


# ------------------------------ JAX glue ------------------------------
def init_params(key):
    ks = jax.random.split(key, 9)
    nrm = lambda k, shp: 0.02 * jax.random.normal(k, shp, jnp.float32)
    return dict(
        word_emb=nrm(ks[0], (2, V, H)),
        pos_emb=nrm(ks[1], (2, S, H)),
        wq=nrm(ks[2], (2, H, H)), bq=jnp.zeros((2, 1, H), jnp.float32),
        wk=nrm(ks[3], (2, H, H)), bk=jnp.zeros((2, 1, H), jnp.float32),
        wv=nrm(ks[4], (2, H, H)), bv=jnp.zeros((2, 1, H), jnp.float32),
        wo=nrm(ks[5], (2, H, H)), bo=jnp.zeros((2, 1, H), jnp.float32),
        ln1g=jnp.ones((2, 1, H), jnp.float32),
        ln1b=jnp.zeros((2, 1, H), jnp.float32),
        w1=nrm(ks[6], (2, H, F)), b1=jnp.zeros((2, 1, F), jnp.float32),
        w2=nrm(ks[7], (2, F, H)), b2=jnp.zeros((2, 1, H), jnp.float32),
        ln2g=jnp.ones((2, 1, H), jnp.float32),
        ln2b=jnp.zeros((2, 1, H), jnp.float32),
        wc=nrm(ks[8], (2, H, L)), bc=jnp.zeros((2, 1, L), jnp.float32),
    )


def pack_params(p):
    """Pack the per-model weight/bias arrays into DMA-friendly slabs.

    Called ONCE outside the per-call forward (packing is hoisted out of the
    jitted path, per review).
    """
    inv_sqrt_h = 1.0 / math.sqrt(H)
    wq_s = p["wq"] * inv_sqrt_h          # fold 1/sqrt(H) attention scale
    bq_s = p["bq"] * inv_sqrt_h

    wc_pad = jnp.pad(p["wc"], ((0, 0), (0, 0), (0, LPAD - L)))
    top = jnp.concatenate(
        [wq_s, p["wk"], p["wv"], p["wo"], wc_pad, p["w1"],
         jnp.zeros((2, H, WTOT - W1_END), jnp.float32)], axis=-1)       # (2, H, 384)
    bot = jnp.concatenate(
        [p["w2"], jnp.zeros((2, F, WTOT - H), jnp.float32)], axis=-1)   # (2, F, 384)
    wslab = jnp.concatenate([top, bot], axis=1).astype(jnp.bfloat16)    # (2, 96, 384)

    def row(vec):   # (2, 1, w) -> (2, 1, 128)
        return jnp.pad(vec, ((0, 0), (0, 0), (0, LPAD - vec.shape[-1])))

    rows = [
        row(jnp.concatenate([bq_s, p["bk"], p["bv"]], axis=-1)),  # fused qkv bias
        row(p["bo"]), row(p["ln1g"]), row(p["ln1b"]),
        row(p["b1"]), row(p["b2"]), row(p["ln2g"]), row(p["ln2b"]),
        row(p["bc"]),
    ]
    pad_rows = jnp.zeros((2, BROWS - len(rows), LPAD), jnp.float32)
    bslab = jnp.concatenate(rows + [pad_rows], axis=1)                  # (2, 16, 128)

    wemb = p["word_emb"].astype(jnp.bfloat16)                           # (2, V, H)
    pos = jnp.tile(p["pos_emb"], (1, B, 1))                             # (2, BS, H) f32
    return dict(wemb=wemb, pos=pos, wslab=wslab, bslab=bslab)


def masked_token_ce(logits_m, labels, row_mask):
    """CrossEntropyLoss(ignore_index=-100) over the rows owned by one model."""
    valid = (labels != IGNORE_INDEX) & row_mask[:, None]
    safe_labels = jnp.where(valid, labels, 0)
    logp = jax.nn.log_softmax(logits_m, axis=-1)
    nll = -jnp.take_along_axis(logp, safe_labels[..., None], axis=-1)[..., 0]
    count = jnp.maximum(jnp.sum(valid), 1)
    return jnp.sum(jnp.where(valid, nll, 0.0)) / count


@jax.jit
def double_token_classifier_forward(slabs, doc_class, input_ids,
                                    attention_mask, labels):
    row_mask = doc_class > 0                    # True -> preamble model (idx 0)

    # One-hot token ids for the in-kernel embedding matmul (shared by both models).
    onehot = jax.nn.one_hot(input_ids.reshape(-1), V, dtype=jnp.bfloat16)  # (BS, V)

    # Block-diagonal + key-padding additive attention bias over flattened rows.
    row_ids = jnp.arange(BS) // S
    same_row = row_ids[:, None] == row_ids[None, :]
    key_valid = attention_mask.reshape(-1) > 0
    attn_bias = jnp.where(same_row & key_valid[None, :], 0.0, -1e9
                          ).astype(jnp.float32)              # (BS, BS)

    logits_pad = run_double_token_classifier(
        onehot, attn_bias, slabs["pos"], slabs["wemb"],
        slabs["wslab"], slabs["bslab"])                       # (2, BS, 128)
    logits_all = logits_pad[:, :, :L].reshape(2, B, S, L)

    # Re-interleave: preamble logits for row_mask rows, judgement otherwise.
    logits = jnp.where(row_mask[:, None, None], logits_all[0], logits_all[1])

    # loss = preamble loss (over its rows) + judgement loss (over its rows)
    loss = (masked_token_ce(logits_all[0], labels, row_mask) +
            masked_token_ce(logits_all[1], labels, ~row_mask))
    return loss, logits


# ------------------------------ main ------------------------------
if __name__ == "__main__":
    key = jax.random.PRNGKey(0)
    k_param, k_ids, k_lab = jax.random.split(key, 3)

    params = init_params(k_param)
    slabs = pack_params(params)        # packed once, outside the jitted forward

    doc_class = jnp.array([1, 0, 2, 0], dtype=jnp.int32)          # (B,)
    input_ids = jax.random.randint(k_ids, (B, S), 0, V, jnp.int32)
    attention_mask = jnp.ones((B, S), dtype=jnp.int32).at[:, S - 2:].set(0)
    labels = jax.random.randint(k_lab, (B, S), 0, L, jnp.int32)
    labels = jnp.where(attention_mask == 1, labels, IGNORE_INDEX)

    loss, logits = double_token_classifier_forward(
        slabs, doc_class, input_ids, attention_mask, labels)
    jax.block_until_ready((loss, logits))

    assert logits.shape == (B, S, L)
    assert jnp.isfinite(loss)
    print("KERNEL_OK")
</pallas_src>

<mosaic_0001>
module attributes {stable_mosaic.version = 11 : i64} {
  func.func @double_tok_cls_kernel(%arg0: i32, %arg1: memref<32x64xbf16, #tpu.memory_space<vmem>>, %arg2: memref<32x32xf32, #tpu.memory_space<vmem>>, %arg3: memref<2x32x32xf32, #tpu.memory_space<vmem>>, %arg4: memref<2x64x32xbf16, #tpu.memory_space<vmem>>, %arg5: memref<2x96x384xbf16, #tpu.memory_space<vmem>>, %arg6: memref<2x16x128xf32, #tpu.memory_space<vmem>>, %arg7: memref<2x32x128xf32, #tpu.memory_space<vmem>>) attributes {dimension_semantics = [#tpu.dimension_semantics<arbitrary>], iteration_bounds = array<i64: 1>, scalar_prefetch = 0 : i64, scratch_operands = 0 : i64, tpu.core_type = #tpu.core_type<tc>, window_params = [{pipeline_mode = #tpu.pipeline_mode<synchronous>, transform_indices = @transform_0, window_bounds = array<i64: 32, 64>}, {pipeline_mode = #tpu.pipeline_mode<synchronous>, transform_indices = @transform_1, window_bounds = array<i64: 32, 32>}, {pipeline_mode = #tpu.pipeline_mode<synchronous>, transform_indices = @transform_2, window_bounds = array<i64: 2, 32, 32>}, {pipeline_mode = #tpu.pipeline_mode<synchronous>, transform_indices = @transform_3, window_bounds = array<i64: 2, 64, 32>}, {pipeline_mode = #tpu.pipeline_mode<synchronous>, transform_indices = @transform_4, window_bounds = array<i64: 2, 96, 384>}, {pipeline_mode = #tpu.pipeline_mode<synchronous>, transform_indices = @transform_5, window_bounds = array<i64: 2, 16, 128>}, {pipeline_mode = #tpu.pipeline_mode<synchronous>, transform_indices = @transform_6, window_bounds = array<i64: 2, 32, 128>}]} {
    %c0 = arith.constant 0 : index
    %c0_0 = arith.constant 0 : index
    %0 = vector.load %arg1[%c0, %c0_0] : memref<32x64xbf16, #tpu.memory_space<vmem>>, vector<32x64xbf16>
    %c0_1 = arith.constant 0 : index
    %c0_2 = arith.constant 0 : index
    %1 = vector.load %arg2[%c0_1, %c0_2] : memref<32x32xf32, #tpu.memory_space<vmem>>, vector<32x32xf32>
    %c0_3 = arith.constant 0 : index
    %c0_4 = arith.constant 0 : index
    %c0_5 = arith.constant 0 : index
    %2 = vector.load %arg5[%c0_3, %c0_4, %c0_5] : memref<2x96x384xbf16, #tpu.memory_space<vmem>>, vector<1x96x384xbf16>
    %3 = vector.shape_cast %2 : vector<1x96x384xbf16> to vector<96x384xbf16>
    %c0_6 = arith.constant 0 : index
    %c0_7 = arith.constant 0 : index
    %c0_8 = arith.constant 0 : index
    %4 = vector.load %arg6[%c0_6, %c0_7, %c0_8] : memref<2x16x128xf32, #tpu.memory_space<vmem>>, vector<1x16x128xf32>
    %5 = vector.shape_cast %4 : vector<1x16x128xf32> to vector<16x128xf32>
    %c0_9 = arith.constant 0 : index
    %c0_10 = arith.constant 0 : index
    %c0_11 = arith.constant 0 : index
    %6 = vector.load %arg4[%c0_9, %c0_10, %c0_11] : memref<2x64x32xbf16, #tpu.memory_space<vmem>>, vector<1x64x32xbf16>
    %7 = vector.shape_cast %6 : vector<1x64x32xbf16> to vector<64x32xbf16>
    %cst = arith.constant dense<0.000000e+00> : vector<32x32xf32>
    %8 = tpu.matmul %0, %7, %cst {dimension_numbers = #tpu.dot_dimension_numbers<[1], [0], [0], [1], [0, 0, 1, 1], [], []>} : vector<32x64xbf16>, vector<64x32xbf16>, vector<32x32xf32> -> vector<32x32xf32>
    %c0_12 = arith.constant 0 : index
    %c0_13 = arith.constant 0 : index
    %c0_14 = arith.constant 0 : index
    %9 = vector.load %arg3[%c0_12, %c0_13, %c0_14] : memref<2x32x32xf32, #tpu.memory_space<vmem>>, vector<1x32x32xf32>
    %10 = vector.shape_cast %9 : vector<1x32x32xf32> to vector<32x32xf32>
    %11 = arith.addf %8, %10 : vector<32x32xf32>
    %12 = arith.truncf %11 : vector<32x32xf32> to vector<32x32xbf16>
    %13 = vector.extract_strided_slice %3 {offsets = [0, 0], sizes = [32, 96], strides = [1, 1]} : vector<96x384xbf16> to vector<32x96xbf16>
    %cst_15 = arith.constant dense<0.000000e+00> : vector<32x96xf32>
    %14 = tpu.matmul %12, %13, %cst_15 {dimension_numbers = #tpu.dot_dimension_numbers<[1], [0], [0], [1], [0, 0, 1, 1], [], []>} : vector<32x32xbf16>, vector<32x96xbf16>, vector<32x96xf32> -> vector<32x96xf32>
    %15 = vector.extract_strided_slice %5 {offsets = [0, 0], sizes = [1, 96], strides = [1, 1]} : vector<16x128xf32> to vector<1x96xf32>
    %16 = vector.broadcast %15 : vector<1x96xf32> to vector<32x96xf32>
    %17 = arith.addf %14, %16 : vector<32x96xf32>
    %18 = vector.extract_strided_slice %17 {offsets = [0, 0], sizes = [32, 32], strides = [1, 1]} : vector<32x96xf32> to vector<32x32xf32>
    %19 = vector.extract_strided_slice %17 {offsets = [0, 32], sizes = [32, 32], strides = [1, 1]} : vector<32x96xf32> to vector<32x32xf32>
    %20 = vector.extract_strided_slice %17 {offsets = [0, 64], sizes = [32, 32], strides = [1, 1]} : vector<32x96xf32> to vector<32x32xf32>
    %21 = arith.truncf %18 : vector<32x32xf32> to vector<32x32xbf16>
    %22 = arith.truncf %19 : vector<32x32xf32> to vector<32x32xbf16>
    %cst_16 = arith.constant dense<0.000000e+00> : vector<32x32xf32>
    %23 = tpu.matmul %21, %22, %cst_16 {dimension_numbers = #tpu.dot_dimension_numbers<[1], [1], [0], [0], [0, 0, 1, 0], [], []>} : vector<32x32xbf16>, vector<32x32xbf16>, vector<32x32xf32> -> vector<32x32xf32>
    %24 = arith.addf %23, %1 : vector<32x32xf32>
    %cst_17 = arith.constant dense<0xFF800000> : vector<32xf32>
    %25 = vector.multi_reduction <maximumf>, %24, %cst_17 [1] : vector<32x32xf32> to vector<32xf32>
    %26 = vector.shape_cast %25 : vector<32xf32> to vector<32x1xf32>
    %27 = vector.broadcast %26 : vector<32x1xf32> to vector<32x32xf32>
    %28 = arith.subf %24, %27 : vector<32x32xf32>
    %29 = math.exp %28 : vector<32x32xf32>
    %cst_18 = arith.constant dense<0.000000e+00> : vector<32xf32>
    %30 = vector.multi_reduction <add>, %29, %cst_18 [1] : vector<32x32xf32> to vector<32xf32>
    %31 = vector.shape_cast %30 : vector<32xf32> to vector<32x1xf32>
    %32 = tpu.reciprocal %31 {approx = true} : vector<32x1xf32> -> vector<32x1xf32>
    %33 = vector.broadcast %32 : vector<32x1xf32> to vector<32x32xf32>
    %34 = arith.mulf %29, %33 : vector<32x32xf32>
    %35 = arith.truncf %34 : vector<32x32xf32> to vector<32x32xbf16>
    %36 = arith.truncf %20 : vector<32x32xf32> to vector<32x32xbf16>
    %cst_19 = arith.constant dense<0.000000e+00> : vector<32x32xf32>
    %37 = tpu.matmul %35, %36, %cst_19 {dimension_numbers = #tpu.dot_dimension_numbers<[1], [0], [0], [1], [0, 0, 1, 1], [], []>} : vector<32x32xbf16>, vector<32x32xbf16>, vector<32x32xf32> -> vector<32x32xf32>
    %38 = arith.truncf %37 : vector<32x32xf32> to vector<32x32xbf16>
    %39 = vector.extract_strided_slice %3 {offsets = [0, 96], sizes = [32, 32], strides = [1, 1]} : vector<96x384xbf16> to vector<32x32xbf16>
    %cst_20 = arith.constant dense<0.000000e+00> : vector<32x32xf32>
    %40 = tpu.matmul %38, %39, %cst_20 {dimension_numbers = #tpu.dot_dimension_numbers<[1], [0], [0], [1], [0, 0, 1, 1], [], []>} : vector<32x32xbf16>, vector<32x32xbf16>, vector<32x32xf32> -> vector<32x32xf32>
    %41 = vector.extract_strided_slice %5 {offsets = [1, 0], sizes = [1, 32], strides = [1, 1]} : vector<16x128xf32> to vector<1x32xf32>
    %42 = vector.broadcast %41 : vector<1x32xf32> to vector<32x32xf32>
    %43 = arith.addf %40, %42 : vector<32x32xf32>
    %44 = arith.addf %11, %43 : vector<32x32xf32>
    %45 = vector.extract_strided_slice %5 {offsets = [2, 0], sizes = [1, 32], strides = [1, 1]} : vector<16x128xf32> to vector<1x32xf32>
    %46 = vector.extract_strided_slice %5 {offsets = [3, 0], sizes = [1, 32], strides = [1, 1]} : vector<16x128xf32> to vector<1x32xf32>
    %cst_21 = arith.constant dense<0.000000e+00> : vector<32xf32>
    %47 = vector.multi_reduction <add>, %44, %cst_21 [1] : vector<32x32xf32> to vector<32xf32>
    %48 = vector.shape_cast %47 : vector<32xf32> to vector<32x1xf32>
    %cst_22 = arith.constant 3.200000e+01 : f32
    %49 = vector.broadcast %cst_22 : f32 to vector<32x1xf32>
    %50 = arith.divf %48, %49 : vector<32x1xf32>
    %51 = arith.mulf %44, %44 : vector<32x32xf32>
    %cst_23 = arith.constant dense<0.000000e+00> : vector<32xf32>
    %52 = vector.multi_reduction <add>, %51, %cst_23 [1] : vector<32x32xf32> to vector<32xf32>
    %53 = vector.shape_cast %52 : vector<32xf32> to vector<32x1xf32>
    %cst_24 = arith.constant 3.200000e+01 : f32
    %54 = vector.broadcast %cst_24 : f32 to vector<32x1xf32>
    %55 = arith.divf %53, %54 : vector<32x1xf32>
    %56 = arith.mulf %50, %50 : vector<32x1xf32>
    %57 = arith.subf %55, %56 : vector<32x1xf32>
    %58 = vector.broadcast %50 : vector<32x1xf32> to vector<32x32xf32>
    %59 = arith.subf %44, %58 : vector<32x32xf32>
    %cst_25 = arith.constant 9.99999996E-13 : f32
    %60 = vector.broadcast %cst_25 : f32 to vector<32x1xf32>
    %61 = arith.addf %57, %60 : vector<32x1xf32>
    %62 = math.rsqrt %61 : vector<32x1xf32>
    %63 = vector.broadcast %62 : vector<32x1xf32> to vector<32x32xf32>
    %64 = arith.mulf %59, %63 : vector<32x32xf32>
    %65 = vector.broadcast %45 : vector<1x32xf32> to vector<32x32xf32>
    %66 = arith.mulf %64, %65 : vector<32x32xf32>
    %67 = vector.broadcast %46 : vector<1x32xf32> to vector<32x32xf32>
    %68 = arith.addf %66, %67 : vector<32x32xf32>
    %69 = arith.truncf %68 : vector<32x32xf32> to vector<32x32xbf16>
    %70 = vector.extract_strided_slice %3 {offsets = [0, 256], sizes = [32, 64], strides = [1, 1]} : vector<96x384xbf16> to vector<32x64xbf16>
    %cst_26 = arith.constant dense<0.000000e+00> : vector<32x64xf32>
    %71 = tpu.matmul %69, %70, %cst_26 {dimension_numbers = #tpu.dot_dimension_numbers<[1], [0], [0], [1], [0, 0, 1, 1], [], []>} : vector<32x32xbf16>, vector<32x64xbf16>, vector<32x64xf32> -> vector<32x64xf32>
    %72 = vector.extract_strided_slice %5 {offsets = [4, 0], sizes = [1, 64], strides = [1, 1]} : vector<16x128xf32> to vector<1x64xf32>
    %73 = vector.broadcast %72 : vector<1x64xf32> to vector<32x64xf32>
    %74 = arith.addf %71, %73 : vector<32x64xf32>
    %75 = arith.mulf %74, %74 : vector<32x64xf32>
    %76 = arith.mulf %74, %75 : vector<32x64xf32>
    %cst_27 = arith.constant 4.471500e-02 : f32
    %77 = vector.broadcast %cst_27 : f32 to vector<32x64xf32>
    %78 = arith.mulf %77, %76 : vector<32x64xf32>
    %79 = arith.addf %74, %78 : vector<32x64xf32>
    %cst_28 = arith.constant 0.797884583 : f32
    %80 = vector.broadcast %cst_28 : f32 to vector<32x64xf32>
    %81 = arith.mulf %80, %79 : vector<32x64xf32>
    %82 = math.tanh %81 : vector<32x64xf32>
    %cst_29 = arith.constant 1.000000e+00 : f32
    %83 = vector.broadcast %cst_29 : f32 to vector<32x64xf32>
    %84 = arith.addf %83, %82 : vector<32x64xf32>
    %cst_30 = arith.constant 5.000000e-01 : f32
    %85 = vector.broadcast %cst_30 : f32 to vector<32x64xf32>
    %86 = arith.mulf %85, %84 : vector<32x64xf32>
    %87 = arith.mulf %74, %86 : vector<32x64xf32>
    %88 = arith.truncf %87 : vector<32x64xf32> to vector<32x64xbf16>
    %89 = vector.extract_strided_slice %3 {offsets = [32, 0], sizes = [64, 32], strides = [1, 1]} : vector<96x384xbf16> to vector<64x32xbf16>
    %cst_31 = arith.constant dense<0.000000e+00> : vector<32x32xf32>
    %90 = tpu.matmul %88, %89, %cst_31 {dimension_numbers = #tpu.dot_dimension_numbers<[1], [0], [0], [1], [0, 0, 1, 1], [], []>} : vector<32x64xbf16>, vector<64x32xbf16>, vector<32x32xf32> -> vector<32x32xf32>
    %91 = vector.extract_strided_slice %5 {offsets = [5, 0], sizes = [1, 32], strides = [1, 1]} : vector<16x128xf32> to vector<1x32xf32>
    %92 = vector.broadcast %91 : vector<1x32xf32> to vector<32x32xf32>
    %93 = arith.addf %90, %92 : vector<32x32xf32>
    %94 = arith.addf %68, %93 : vector<32x32xf32>
    %95 = vector.extract_strided_slice %5 {offsets = [6, 0], sizes = [1, 32], strides = [1, 1]} : vector<16x128xf32> to vector<1x32xf32>
    %96 = vector.extract_strided_slice %5 {offsets = [7, 0], sizes = [1, 32], strides = [1, 1]} : vector<16x128xf32> to vector<1x32xf32>
    %cst_32 = arith.constant dense<0.000000e+00> : vector<32xf32>
    %97 = vector.multi_reduction <add>, %94, %cst_32 [1] : vector<32x32xf32> to vector<32xf32>
    %98 = vector.shape_cast %97 : vector<32xf32> to vector<32x1xf32>
    %cst_33 = arith.constant 3.200000e+01 : f32
    %99 = vector.broadcast %cst_33 : f32 to vector<32x1xf32>
    %100 = arith.divf %98, %99 : vector<32x1xf32>
    %101 = arith.mulf %94, %94 : vector<32x32xf32>
    %cst_34 = arith.constant dense<0.000000e+00> : vector<32xf32>
    %102 = vector.multi_reduction <add>, %101, %cst_34 [1] : vector<32x32xf32> to vector<32xf32>
    %103 = vector.shape_cast %102 : vector<32xf32> to vector<32x1xf32>
    %cst_35 = arith.constant 3.200000e+01 : f32
    %104 = vector.broadcast %cst_35 : f32 to vector<32x1xf32>
    %105 = arith.divf %103, %104 : vector<32x1xf32>
    %106 = arith.mulf %100, %100 : vector<32x1xf32>
    %107 = arith.subf %105, %106 : vector<32x1xf32>
    %108 = vector.broadcast %100 : vector<32x1xf32> to vector<32x32xf32>
    %109 = arith.subf %94, %108 : vector<32x32xf32>
    %cst_36 = arith.constant 9.99999996E-13 : f32
    %110 = vector.broadcast %cst_36 : f32 to vector<32x1xf32>
    %111 = arith.addf %107, %110 : vector<32x1xf32>
    %112 = math.rsqrt %111 : vector<32x1xf32>
    %113 = vector.broadcast %112 : vector<32x1xf32> to vector<32x32xf32>
    %114 = arith.mulf %109, %113 : vector<32x32xf32>
    %115 = vector.broadcast %95 : vector<1x32xf32> to vector<32x32xf32>
    %116 = arith.mulf %114, %115 : vector<32x32xf32>
    %117 = vector.broadcast %96 : vector<1x32xf32> to vector<32x32xf32>
    %118 = arith.addf %116, %117 : vector<32x32xf32>
    %119 = arith.truncf %118 : vector<32x32xf32> to vector<32x32xbf16>
    %120 = vector.extract_strided_slice %3 {offsets = [0, 128], sizes = [32, 128], strides = [1, 1]} : vector<96x384xbf16> to vector<32x128xbf16>
    %cst_37 = arith.constant dense<0.000000e+00> : vector<32x128xf32>
    %121 = tpu.matmul %119, %120, %cst_37 {dimension_numbers = #tpu.dot_dimension_numbers<[1], [0], [0], [1], [0, 0, 1, 1], [], []>} : vector<32x32xbf16>, vector<32x128xbf16>, vector<32x128xf32> -> vector<32x128xf32>
    %122 = vector.extract_strided_slice %5 {offsets = [8, 0], sizes = [1, 128], strides = [1, 1]} : vector<16x128xf32> to vector<1x128xf32>
    %123 = vector.broadcast %122 : vector<1x128xf32> to vector<32x128xf32>
    %124 = arith.addf %121, %123 : vector<32x128xf32>
    %c0_38 = arith.constant 0 : index
    %c0_39 = arith.constant 0 : index
    %c0_40 = arith.constant 0 : index
    %125 = vector.load %arg7[%c0_38, %c0_39, %c0_40] : memref<2x32x128xf32, #tpu.memory_space<vmem>>, vector<1x32x128xf32>
    %126 = vector.shape_cast %125 : vector<1x32x128xf32> to vector<32x128xf32>
    %127 = vector.shape_cast %124 : vector<32x128xf32> to vector<1x32x128xf32>
    tpu.vector_store %arg7[%c0_38, %c0_39, %c0_40], %127 {strides = array<i32>} : memref<2x32x128xf32, #tpu.memory_space<vmem>>, vector<1x32x128xf32>,
    %c1 = arith.constant 1 : index
    %c0_41 = arith.constant 0 : index
    %c0_42 = arith.constant 0 : index
    %128 = vector.load %arg5[%c1, %c0_41, %c0_42] : memref<2x96x384xbf16, #tpu.memory_space<vmem>>, vector<1x96x384xbf16>
    %129 = vector.shape_cast %128 : vector<1x96x384xbf16> to vector<96x384xbf16>
    %c1_43 = arith.constant 1 : index
    %c0_44 = arith.constant 0 : index
    %c0_45 = arith.constant 0 : index
    %130 = vector.load %arg6[%c1_43, %c0_44, %c0_45] : memref<2x16x128xf32, #tpu.memory_space<vmem>>, vector<1x16x128xf32>
    %131 = vector.shape_cast %130 : vector<1x16x128xf32> to vector<16x128xf32>
    %c1_46 = arith.constant 1 : index
    %c0_47 = arith.constant 0 : index
    %c0_48 = arith.constant 0 : index
    %132 = vector.load %arg4[%c1_46, %c0_47, %c0_48] : memref<2x64x32xbf16, #tpu.memory_space<vmem>>, vector<1x64x32xbf16>
    %133 = vector.shape_cast %132 : vector<1x64x32xbf16> to vector<64x32xbf16>
    %cst_49 = arith.constant dense<0.000000e+00> : vector<32x32xf32>
    %134 = tpu.matmul %0, %133, %cst_49 {dimension_numbers = #tpu.dot_dimension_numbers<[1], [0], [0], [1], [0, 0, 1, 1], [], []>} : vector<32x64xbf16>, vector<64x32xbf16>, vector<32x32xf32> -> vector<32x32xf32>
    %c1_50 = arith.constant 1 : index
    %c0_51 = arith.constant 0 : index
    %c0_52 = arith.constant 0 : index
    %135 = vector.load %arg3[%c1_50, %c0_51, %c0_52] : memref<2x32x32xf32, #tpu.memory_space<vmem>>, vector<1x32x32xf32>
    %136 = vector.shape_cast %135 : vector<1x32x32xf32> to vector<32x32xf32>
    %137 = arith.addf %134, %136 : vector<32x32xf32>
    %138 = arith.truncf %137 : vector<32x32xf32> to vector<32x32xbf16>
    %139 = vector.extract_strided_slice %129 {offsets = [0, 0], sizes = [32, 96], strides = [1, 1]} : vector<96x384xbf16> to vector<32x96xbf16>
    %cst_53 = arith.constant dense<0.000000e+00> : vector<32x96xf32>
    %140 = tpu.matmul %138, %139, %cst_53 {dimension_numbers = #tpu.dot_dimension_numbers<[1], [0], [0], [1], [0, 0, 1, 1], [], []>} : vector<32x32xbf16>, vector<32x96xbf16>, vector<32x96xf32> -> vector<32x96xf32>
    %141 = vector.extract_strided_slice %131 {offsets = [0, 0], sizes = [1, 96], strides = [1, 1]} : vector<16x128xf32> to vector<1x96xf32>
    %142 = vector.broadcast %141 : vector<1x96xf32> to vector<32x96xf32>
    %143 = arith.addf %140, %142 : vector<32x96xf32>
    %144 = vector.extract_strided_slice %143 {offsets = [0, 0], sizes = [32, 32], strides = [1, 1]} : vector<32x96xf32> to vector<32x32xf32>
    %145 = vector.extract_strided_slice %143 {offsets = [0, 32], sizes = [32, 32], strides = [1, 1]} : vector<32x96xf32> to vector<32x32xf32>
    %146 = vector.extract_strided_slice %143 {offsets = [0, 64], sizes = [32, 32], strides = [1, 1]} : vector<32x96xf32> to vector<32x32xf32>
    %147 = arith.truncf %144 : vector<32x32xf32> to vector<32x32xbf16>
    %148 = arith.truncf %145 : vector<32x32xf32> to vector<32x32xbf16>
    %cst_54 = arith.constant dense<0.000000e+00> : vector<32x32xf32>
    %149 = tpu.matmul %147, %148, %cst_54 {dimension_numbers = #tpu.dot_dimension_numbers<[1], [1], [0], [0], [0, 0, 1, 0], [], []>} : vector<32x32xbf16>, vector<32x32xbf16>, vector<32x32xf32> -> vector<32x32xf32>
    %150 = arith.addf %149, %1 : vector<32x32xf32>
    %cst_55 = arith.constant dense<0xFF800000> : vector<32xf32>
    %151 = vector.multi_reduction <maximumf>, %150, %cst_55 [1] : vector<32x32xf32> to vector<32xf32>
    %152 = vector.shape_cast %151 : vector<32xf32> to vector<32x1xf32>
    %153 = vector.broadcast %152 : vector<32x1xf32> to vector<32x32xf32>
    %154 = arith.subf %150, %153 : vector<32x32xf32>
    %155 = math.exp %154 : vector<32x32xf32>
    %cst_56 = arith.constant dense<0.000000e+00> : vector<32xf32>
    %156 = vector.multi_reduction <add>, %155, %cst_56 [1] : vector<32x32xf32> to vector<32xf32>
    %157 = vector.shape_cast %156 : vector<32xf32> to vector<32x1xf32>
    %158 = tpu.reciprocal %157 {approx = true} : vector<32x1xf32> -> vector<32x1xf32>
    %159 = vector.broadcast %158 : vector<32x1xf32> to vector<32x32xf32>
    %160 = arith.mulf %155, %159 : vector<32x32xf32>
    %161 = arith.truncf %160 : vector<32x32xf32> to vector<32x32xbf16>
    %162 = arith.truncf %146 : vector<32x32xf32> to vector<32x32xbf16>
    %cst_57 = arith.constant dense<0.000000e+00> : vector<32x32xf32>
    %163 = tpu.matmul %161, %162, %cst_57 {dimension_numbers = #tpu.dot_dimension_numbers<[1], [0], [0], [1], [0, 0, 1, 1], [], []>} : vector<32x32xbf16>, vector<32x32xbf16>, vector<32x32xf32> -> vector<32x32xf32>
    %164 = arith.truncf %163 : vector<32x32xf32> to vector<32x32xbf16>
    %165 = vector.extract_strided_slice %129 {offsets = [0, 96], sizes = [32, 32], strides = [1, 1]} : vector<96x384xbf16> to vector<32x32xbf16>
    %cst_58 = arith.constant dense<0.000000e+00> : vector<32x32xf32>
    %166 = tpu.matmul %164, %165, %cst_58 {dimension_numbers = #tpu.dot_dimension_numbers<[1], [0], [0], [1], [0, 0, 1, 1], [], []>} : vector<32x32xbf16>, vector<32x32xbf16>, vector<32x32xf32> -> vector<32x32xf32>
    %167 = vector.extract_strided_slice %131 {offsets = [1, 0], sizes = [1, 32], strides = [1, 1]} : vector<16x128xf32> to vector<1x32xf32>
    %168 = vector.broadcast %167 : vector<1x32xf32> to vector<32x32xf32>
    %169 = arith.addf %166, %168 : vector<32x32xf32>
    %170 = arith.addf %137, %169 : vector<32x32xf32>
    %171 = vector.extract_strided_slice %131 {offsets = [2, 0], sizes = [1, 32], strides = [1, 1]} : vector<16x128xf32> to vector<1x32xf32>
    %172 = vector.extract_strided_slice %131 {offsets = [3, 0], sizes = [1, 32], strides = [1, 1]} : vector<16x128xf32> to vector<1x32xf32>
    %cst_59 = arith.constant dense<0.000000e+00> : vector<32xf32>
    %173 = vector.multi_reduction <add>, %170, %cst_59 [1] : vector<32x32xf32> to vector<32xf32>
    %174 = vector.shape_cast %173 : vector<32xf32> to vector<32x1xf32>
    %cst_60 = arith.constant 3.200000e+01 : f32
    %175 = vector.broadcast %cst_60 : f32 to vector<32x1xf32>
    %176 = arith.divf %174, %175 : vector<32x1xf32>
    %177 = arith.mulf %170, %170 : vector<32x32xf32>
    %cst_61 = arith.constant dense<0.000000e+00> : vector<32xf32>
    %178 = vector.multi_reduction <add>, %177, %cst_61 [1] : vector<32x32xf32> to vector<32xf32>
    %179 = vector.shape_cast %178 : vector<32xf32> to vector<32x1xf32>
    %cst_62 = arith.constant 3.200000e+01 : f32
    %180 = vector.broadcast %cst_62 : f32 to vector<32x1xf32>
    %181 = arith.divf %179, %180 : vector<32x1xf32>
    %182 = arith.mulf %176, %176 : vector<32x1xf32>
    %183 = arith.subf %181, %182 : vector<32x1xf32>
    %184 = vector.broadcast %176 : vector<32x1xf32> to vector<32x32xf32>
    %185 = arith.subf %170, %184 : vector<32x32xf32>
    %cst_63 = arith.constant 9.99999996E-13 : f32
    %186 = vector.broadcast %cst_63 : f32 to vector<32x1xf32>
    %187 = arith.addf %183, %186 : vector<32x1xf32>
    %188 = math.rsqrt %187 : vector<32x1xf32>
    %189 = vector.broadcast %188 : vector<32x1xf32> to vector<32x32xf32>
    %190 = arith.mulf %185, %189 : vector<32x32xf32>
    %191 = vector.broadcast %171 : vector<1x32xf32> to vector<32x32xf32>
    %192 = arith.mulf %190, %191 : vector<32x32xf32>
    %193 = vector.broadcast %172 : vector<1x32xf32> to vector<32x32xf32>
    %194 = arith.addf %192, %193 : vector<32x32xf32>
    %195 = arith.truncf %194 : vector<32x32xf32> to vector<32x32xbf16>
    %196 = vector.extract_strided_slice %129 {offsets = [0, 256], sizes = [32, 64], strides = [1, 1]} : vector<96x384xbf16> to vector<32x64xbf16>
    %cst_64 = arith.constant dense<0.000000e+00> : vector<32x64xf32>
    %197 = tpu.matmul %195, %196, %cst_64 {dimension_numbers = #tpu.dot_dimension_numbers<[1], [0], [0], [1], [0, 0, 1, 1], [], []>} : vector<32x32xbf16>, vector<32x64xbf16>, vector<32x64xf32> -> vector<32x64xf32>
    %198 = vector.extract_strided_slice %131 {offsets = [4, 0], sizes = [1, 64], strides = [1, 1]} : vector<16x128xf32> to vector<1x64xf32>
    %199 = vector.broadcast %198 : vector<1x64xf32> to vector<32x64xf32>
    %200 = arith.addf %197, %199 : vector<32x64xf32>
    %201 = arith.mulf %200, %200 : vector<32x64xf32>
    %202 = arith.mulf %200, %201 : vector<32x64xf32>
    %cst_65 = arith.constant 4.471500e-02 : f32
    %203 = vector.broadcast %cst_65 : f32 to vector<32x64xf32>
    %204 = arith.mulf %203, %202 : vector<32x64xf32>
    %205 = arith.addf %200, %204 : vector<32x64xf32>
    %cst_66 = arith.constant 0.797884583 : f32
    %206 = vector.broadcast %cst_66 : f32 to vector<32x64xf32>
    %207 = arith.mulf %206, %205 : vector<32x64xf32>
    %208 = math.tanh %207 : vector<32x64xf32>
    %cst_67 = arith.constant 1.000000e+00 : f32
    %209 = vector.broadcast %cst_67 : f32 to vector<32x64xf32>
    %210 = arith.addf %209, %208 : vector<32x64xf32>
    %cst_68 = arith.constant 5.000000e-01 : f32
    %211 = vector.broadcast %cst_68 : f32 to vector<32x64xf32>
    %212 = arith.mulf %211, %210 : vector<32x64xf32>
    %213 = arith.mulf %200, %212 : vector<32x64xf32>
    %214 = arith.truncf %213 : vector<32x64xf32> to vector<32x64xbf16>
    %215 = vector.extract_strided_slice %129 {offsets = [32, 0], sizes = [64, 32], strides = [1, 1]} : vector<96x384xbf16> to vector<64x32xbf16>
    %cst_69 = arith.constant dense<0.000000e+00> : vector<32x32xf32>
    %216 = tpu.matmul %214, %215, %cst_69 {dimension_numbers = #tpu.dot_dimension_numbers<[1], [0], [0], [1], [0, 0, 1, 1], [], []>} : vector<32x64xbf16>, vector<64x32xbf16>, vector<32x32xf32> -> vector<32x32xf32>
    %217 = vector.extract_strided_slice %131 {offsets = [5, 0], sizes = [1, 32], strides = [1, 1]} : vector<16x128xf32> to vector<1x32xf32>
    %218 = vector.broadcast %217 : vector<1x32xf32> to vector<32x32xf32>
    %219 = arith.addf %216, %218 : vector<32x32xf32>
    %220 = arith.addf %194, %219 : vector<32x32xf32>
    %221 = vector.extract_strided_slice %131 {offsets = [6, 0], sizes = [1, 32], strides = [1, 1]} : vector<16x128xf32> to vector<1x32xf32>
    %222 = vector.extract_strided_slice %131 {offsets = [7, 0], sizes = [1, 32], strides = [1, 1]} : vector<16x128xf32> to vector<1x32xf32>
    %cst_70 = arith.constant dense<0.000000e+00> : vector<32xf32>
    %223 = vector.multi_reduction <add>, %220, %cst_70 [1] : vector<32x32xf32> to vector<32xf32>
    %224 = vector.shape_cast %223 : vector<32xf32> to vector<32x1xf32>
    %cst_71 = arith.constant 3.200000e+01 : f32
    %225 = vector.broadcast %cst_71 : f32 to vector<32x1xf32>
    %226 = arith.divf %224, %225 : vector<32x1xf32>
    %227 = arith.mulf %220, %220 : vector<32x32xf32>
    %cst_72 = arith.constant dense<0.000000e+00> : vector<32xf32>
    %228 = vector.multi_reduction <add>, %227, %cst_72 [1] : vector<32x32xf32> to vector<32xf32>
    %229 = vector.shape_cast %228 : vector<32xf32> to vector<32x1xf32>
    %cst_73 = arith.constant 3.200000e+01 : f32
    %230 = vector.broadcast %cst_73 : f32 to vector<32x1xf32>
    %231 = arith.divf %229, %230 : vector<32x1xf32>
    %232 = arith.mulf %226, %226 : vector<32x1xf32>
    %233 = arith.subf %231, %232 : vector<32x1xf32>
    %234 = vector.broadcast %226 : vector<32x1xf32> to vector<32x32xf32>
    %235 = arith.subf %220, %234 : vector<32x32xf32>
    %cst_74 = arith.constant 9.99999996E-13 : f32
    %236 = vector.broadcast %cst_74 : f32 to vector<32x1xf32>
    %237 = arith.addf %233, %236 : vector<32x1xf32>
    %238 = math.rsqrt %237 : vector<32x1xf32>
    %239 = vector.broadcast %238 : vector<32x1xf32> to vector<32x32xf32>
    %240 = arith.mulf %235, %239 : vector<32x32xf32>
    %241 = vector.broadcast %221 : vector<1x32xf32> to vector<32x32xf32>
    %242 = arith.mulf %240, %241 : vector<32x32xf32>
    %243 = vector.broadcast %222 : vector<1x32xf32> to vector<32x32xf32>
    %244 = arith.addf %242, %243 : vector<32x32xf32>
    %245 = arith.truncf %244 : vector<32x32xf32> to vector<32x32xbf16>
    %246 = vector.extract_strided_slice %129 {offsets = [0, 128], sizes = [32, 128], strides = [1, 1]} : vector<96x384xbf16> to vector<32x128xbf16>
    %cst_75 = arith.constant dense<0.000000e+00> : vector<32x128xf32>
    %247 = tpu.matmul %245, %246, %cst_75 {dimension_numbers = #tpu.dot_dimension_numbers<[1], [0], [0], [1], [0, 0, 1, 1], [], []>} : vector<32x32xbf16>, vector<32x128xbf16>, vector<32x128xf32> -> vector<32x128xf32>
    %248 = vector.extract_strided_slice %131 {offsets = [8, 0], sizes = [1, 128], strides = [1, 1]} : vector<16x128xf32> to vector<1x128xf32>
    %249 = vector.broadcast %248 : vector<1x128xf32> to vector<32x128xf32>
    %250 = arith.addf %247, %249 : vector<32x128xf32>
    %c1_76 = arith.constant 1 : index
    %c0_77 = arith.constant 0 : index
    %c0_78 = arith.constant 0 : index
    %251 = vector.load %arg7[%c1_76, %c0_77, %c0_78] : memref<2x32x128xf32, #tpu.memory_space<vmem>>, vector<1x32x128xf32>
    %252 = vector.shape_cast %251 : vector<1x32x128xf32> to vector<32x128xf32>
    %253 = vector.shape_cast %250 : vector<32x128xf32> to vector<1x32x128xf32>
    tpu.vector_store %arg7[%c1_76, %c0_77, %c0_78], %253 {strides = array<i32>} : memref<2x32x128xf32, #tpu.memory_space<vmem>>, vector<1x32x128xf32>,
    return
  }
  func.func @transform_0(%arg0: i32) -> (i32, i32) {
    %c0_i32 = arith.constant 0 : i32
    %c0_i32_0 = arith.constant 0 : i32
    %c0_i32_1 = arith.constant 0 : i32
    return %c0_i32, %c0_i32_0 : i32, i32
  }
  func.func @transform_1(%arg0: i32) -> (i32, i32) {
    %c0_i32 = arith.constant 0 : i32
    %c0_i32_0 = arith.constant 0 : i32
    %c0_i32_1 = arith.constant 0 : i32
    return %c0_i32, %c0_i32_0 : i32, i32
  }
  func.func @transform_2(%arg0: i32) -> (i32, i32, i32) {
    %c0_i32 = arith.constant 0 : i32
    %c0_i32_0 = arith.constant 0 : i32
    %c0_i32_1 = arith.constant 0 : i32
    %c0_i32_2 = arith.constant 0 : i32
    return %c0_i32, %c0_i32_0, %c0_i32_1 : i32, i32, i32
  }
  func.func @transform_3(%arg0: i32) -> (i32, i32, i32) {
    %c0_i32 = arith.constant 0 : i32
    %c0_i32_0 = arith.constant 0 : i32
    %c0_i32_1 = arith.constant 0 : i32
    %c0_i32_2 = arith.constant 0 : i32
    return %c0_i32, %c0_i32_0, %c0_i32_1 : i32, i32, i32
  }
  func.func @transform_4(%arg0: i32) -> (i32, i32, i32) {
    %c0_i32 = arith.constant 0 : i32
    %c0_i32_0 = arith.constant 0 : i32
    %c0_i32_1 = arith.constant 0 : i32
    %c0_i32_2 = arith.constant 0 : i32
    return %c0_i32, %c0_i32_0, %c0_i32_1 : i32, i32, i32
  }
  func.func @transform_5(%arg0: i32) -> (i32, i32, i32) {
    %c0_i32 = arith.constant 0 : i32
    %c0_i32_0 = arith.constant 0 : i32
    %c0_i32_1 = arith.constant 0 : i32
    %c0_i32_2 = arith.constant 0 : i32
    return %c0_i32, %c0_i32_0, %c0_i32_1 : i32, i32, i32
  }
  func.func @transform_6(%arg0: i32) -> (i32, i32, i32) {
    %c0_i32 = arith.constant 0 : i32
    %c0_i32_0 = arith.constant 0 : i32
    %c0_i32_1 = arith.constant 0 : i32
    %c0_i32_2 = arith.constant 0 : i32
    return %c0_i32, %c0_i32_0, %c0_i32_1 : i32, i32, i32
  }
}

</mosaic_0001>

<bundles_post_ra>
// kernel: eq.1
= control target key start
LH: loop header
LB: loop body
LE: loop exit
PB: predicated region body
PF: predicated region fallthrough
CT: control target
= control target key end

     0   :  { %vm8_vm0 = vcmask 64512   ;;  %s40_s8 = smov 8   ;;  %s41_s9 = smov 16   ;;  %vm14_vm1 = vcmask 261312   ;;  %vm20_vm2 = vcmask 195712   ;;  %vm26_vm3 = vcmask 130112   ;;  %s58_s0 = inlined_call_operand.vmem [shape: s32[4,8], index: 0, kind: input, shape index: {}]   ;;  %s59_s1 = inlined_call_operand.vmem [shape: s32[32], index: 1, kind: output, shape index: {}]  }
   0x1   :  { %v5_v0 = vld [vmem:[%s58_s0] sm:$0xf]  ;;  %s39_s0 = smov 24  }
   0x2   :  { %6 = vst [vmem:[#allocation1] sm:$0xf] %v5_v0 }
   0x9   :  { %v11_v1 = vld [vmem:[#allocation1 + $0x3] sm:$0x1]   ;;  %v23_v2 = vld [vmem:[#allocation1 + $0x1] sm:$0x1]   ;;  %v7_v3 = vld [vmem:[#allocation1] sm:$0x1]  }
   0xa   :  { %12 = vrot.lane.b32.xlu0 %v11_v1, %s39_s0  ;;  %24 = vrot.lane.b32.xlu1 %v23_v2, %s40_s8  ;;  %v17_v4 = vld [vmem:[#allocation1 + $0x2] sm:$0x1]   ;;  %9 = vst.msk [vmem:[#allocation0] sm:$0x1] %vm8_vm0, %v7_v3  }
   0xe   :  { %18 = vrot.lane.b32.xlu0 %v17_v4, %s41_s9 }
  0x7c   :  { %v13_v5 = vpop.permute.xlu0 %12   ;;  %v25_v6 = vpop.permute.xlu1 %24  }
  0x7d   :  { %15 = vst.msk [vmem:[#allocation0] sm:$0x1] %vm14_vm1, %v13_v5  }
  0x80   :  { %v19_v7 = vpop.permute.xlu0 %18  }
  0x81   :  { %21 = vst.msk [vmem:[#allocation0] sm:$0x1] %vm20_vm2, %v19_v7  }
  0x82   :  { %27 = vst.msk [vmem:[#allocation0] sm:$0x1] %vm26_vm3, %v25_v6  }
  0x89   :  { %v32_v8 = vld [vmem:[#allocation0] sm:$0x1] }
  0x8a   :  { %35 = vst [vmem:[%s59_s1] sm:$0x1] %v32_v8 }

// kernel: double_token_classifier_forward.1
= control target key start
LH: loop header
LB: loop body
LE: loop exit
PB: predicated region body
PF: predicated region fallthrough
CT: control target
= control target key end

     0   :  { %11 = vsyncpa [#allocation3], 0  ;;  %s2808_s0 = inlined_call_operand.vmem [shape: bf16[32,64], index: 0, kind: input, shape index: {}]   ;;  %s2809_s1 = inlined_call_operand.vmem [shape: f32[32,32], index: 1, kind: input, shape index: {}]   ;;  %s2810_s2 = inlined_call_operand.hbm [shape: f32[2,32,32], index: 2, kind: input, shape index: {}]   ;;  %s2811_s3 = inlined_call_operand.vmem [shape: bf16[2,64,32], index: 3, kind: input, shape index: {}]   ;;  %s2812_s4 = inlined_call_operand.vmem [shape: bf16[2,96,384], index: 4, kind: input, shape index: {}]   ;;  %s2813_s5 = inlined_call_operand.hbm [shape: f32[2,16,128], index: 5, kind: input, shape index: {}]   ;;  %s2814_s6 = inlined_call_operand.vmem [shape: f32[2,32,128], index: 6, kind: output, shape index: {}]  }
   0x1   :  { %12 = vsyncpa [#allocation5], 0  ;;  %s2257_s21 = smov [#allocation2]  }
   0x2   :  { %s22_s22 = sshll.u32 %s2257_s21, 4  ;;  %s23_s22 = int_to_ptr.vmem [resolvable:$true] %s22_s22 }
   0x3   :  { %s2221_s23 = scalar_lea.vmem %s23_s22, 1024  ;;  %p2226_p1 = scmp.lt.s32.totalorder %s23_s22, %s23_s22 }
   0x4   :  { %p2222_p0 = scmp.ne.s32.totalorder %s23_s22, %s2221_s23  ;;  %p2227_p2 = scmp.lt.s32.totalorder %s2221_s23, %s2221_s23 }
   0x6   :  { %p2228_p3 = por %p2227_p2, %p2226_p1 }
   0x8   :  { %p2229_p4 = pnand %p2228_p3, %p2222_p0 }
   0xa   :  { %2232 = shalt.err (!%p2229_p4)
}
   0xb   :  { %s2258_s24 = smov 128   ;;  %s2259_s25 = smov 8  }
   0xc   :  { %28 = dma.hbm_to_vmem [thread:$0]  %s2810_s2, 1024, %s23_s22, [#allocation3], %s2258_s24, %s2258_s24, %s2259_s25  }
   0xd   :  { %s2260_s28 = smov [#allocation4]  }
   0xe   :  { %s38_s29 = sshll.u32 %s2260_s28, 4  ;;  %s39_s29 = int_to_ptr.vmem [resolvable:$true] %s38_s29 }
   0xf   :  { %s2241_s30 = scalar_lea.vmem %s39_s29, 512  ;;  %p2246_p6 = scmp.lt.s32.totalorder %s39_s29, %s39_s29 }
  0x10   :  { %p2242_p5 = scmp.ne.s32.totalorder %s39_s29, %s2241_s30  ;;  %p2247_p7 = scmp.lt.s32.totalorder %s2241_s30, %s2241_s30 }
  0x12   :  { %p2248_p8 = por %p2247_p7, %p2246_p6 }
  0x14   :  { %p2249_p9 = pnand %p2248_p8, %p2242_p5 }
  0x16   :  { %2252 = shalt.err (!%p2249_p9)
}
  0x17   :  { %44 = dma.hbm_to_vmem [thread:$0]  %s2813_s5, 512, %s39_s29, [#allocation5], %s2258_s24, %s2258_s24, %s2259_s25  }
  0x18   :  { %2253 = dma.done.wait [#allocation3], 1024  }
  0x19   :  { %2254 = vsyncadd [#allocation3], 4294966272 }
  0x1a   :  { %2255 = dma.done.wait [#allocation5], 512  }
  0x1b   :  { %2256 = vsyncadd [#allocation5], 4294966784  ;;  %v2099_v0 = vld [vmem:[%s2811_s3 + $0x18] sm:$0xff]   ;;  %v2100_v1 = vld [vmem:[%s2811_s3 + $0x10] sm:$0xff]   ;;  %vm124_vm0 = vcmask 523264   ;;  %vm198_vm1 = vcmask 261120   ;;  %v182_v22 = vlaneseq }
  0x1c   :  { %1944 = vmatprep.subr.bf16.mxu0 %v2099_v0  ;;  %v2101_v2 = vld [vmem:[%s2811_s3 + $0x8] sm:$0xff]   ;;  %v2317_v3 = vld [vmem:[%s2808_s0] sm:$0xff]   ;;  %v89_v10 = vld [vmem:[#allocation2 + $0x18] sm:$0xff]  ;;  %s2262_s7 = smov 64  }
  0x1d   :  { %1945 = vmatpush3.bf16.msra.mxu0 %v2099_v0  ;;  %v2102_v4 = vld [vmem:[%s2811_s3] sm:$0xff]   ;;  %1952 = vmatprep.mubr.msk.bf16.mxu0 %vm124_vm0, %v2317_v3  ;;  %v2327_v5 = vld [vmem:[%s2808_s0 + $0x8] sm:$0xff]   ;;  %v88_v14 = vld [vmem:[#allocation2 + $0x10] sm:$0xff]  ;;  %v2359_v23 = vshrl.u32 %v182_v22, 7  ;;  %s2261_s0 = smov 96  }
  0x1e   :  { %1946 = vmatprep.subr.bf16.mxu0 %v2100_v1  ;;  %v2334_v6 = vld [vmem:[%s2812_s4 + $0x18] ss:$12 sps:$4 sm:$0xff]   ;;  %v2341_v7 = vld [vmem:[%s2812_s4] ss:$12 sps:$4 sm:$0xff]   ;;  %v2383_v41 = vld [vmem:[%s2809_s1 + $0x10] sm:$0xff] }
  0x1f   :  { %1956 = vmatprep.subr.bf16.mxu1 %v2334_v6  ;;  %v86_v11 = vld [vmem:[#allocation2] sm:$0xff]  ;;  %v87_v13 = vld [vmem:[#allocation2 + $0x8] sm:$0xff]  ;;  %v2362_v24 = vsub.s32 0, %v2359_v23  ;;  %v2402_v51 = vld [vmem:[%s2809_s1 + $0x18] sm:$0xff] }
  0x20   :  { %1957 = vmatpush3.bf16.msra.mxu1 %v2334_v6  ;;  %v2364_v25 = vld [vmem:[#allocation4] sm:$0xff]  ;;  %v2396_v49 = vld [vmem:[%s2809_s1 + $0x8] sm:$0xff] }
  0x21   :  { %1947 = vmatpush3.bf16.msra.mxu0 %v2100_v1  ;;  %1958 = vmatprep.subr.bf16.mxu1 %v2341_v7  ;;  %v185_v27 = vrot.slane %v2364_v25, %v2362_v24  ;;  %v2388_v43 = vld [vmem:[%s2809_s1] sm:$0xff]  ;;  %s2263_s1 = smov 32  }
  0x22   :  { %1948 = vmatprep.subr.bf16.mxu0 %v2101_v2 }
  0x24   :  { %1959 = vmatpush3.bf16.msra.mxu1 %v2341_v7 }
  0x25   :  { %1949 = vmatpush3.bf16.msra.mxu0 %v2101_v2 }
  0x26   :  { %1950 = vmatprep.subr.bf16.mxu0 %v2102_v4 }
  0x29   :  { %1951 = vmatpush3.bf16.msra.mxu0 %v2102_v4 }
  0x2c   :  { %1953 = vmatmul.mubr.msk.bf16.vlgmr.msra.gmra.mxu0 %vm124_vm0, %v2327_v5 }
  0xec   :  { %v1954_v8 = vpop.f32.mrf.mxu0 }
  0xed   :  { %v2351_v19 = vadd.f32 %v1954_v8, %v88_v14 }
  0xee   :  { %v165_v9 = vpop.f32.mrf.mxu0 }
  0xef   :  { %v2347_v17 = vadd.f32 %v165_v9, %v86_v11 }
  0xf0   :  { %v1955_v12 = vpop.f32.mrf.mxu0 }
  0xf1   :  { %v2345_v15 = vadd.f32 %v1955_v12, %v89_v10 }
  0xf2   :  { %v168_v16 = vpop.f32.mrf.mxu0 }
  0xf3   :  { %v2349_v18 = vadd.f32 %v168_v16, %v87_v13  ;;  %v181_v21 = vpack.c.bf16 %v2345_v15, %v2351_v19 }
  0xf5   :  { %v180_v20 = vpack.c.bf16 %v2349_v18, %v2347_v17 }
  0xf7   :  { %1960 = vmatprep.mubr.msk.bf16.mxu1 %vm198_vm1, %v180_v20 }
  0xf8   :  { %1961 = vmatmul.mubr.msk.bf16.vlgmr.msra.gmra.mxu1 %vm198_vm1, %v181_v21 }
 0x1b8   :  { %v1962_v26 = vpop.f32.mrf.mxu1 }
 0x1b9   :  { %v248_v30 = vadd.f32 %v1962_v26, %v185_v27 }
 0x1ba   :  { %v239_v28 = vpop.f32.mrf.mxu1 }
 0x1bb   :  { %v240_v33 = vadd.f32 %v239_v28, %v185_v27 }
 0x1bc   :  { %v1963_v29 = vpop.f32.mrf.mxu1 }
 0x1bd   :  { %v251_v31 = vadd.f32 %v1963_v29, %v185_v27 }
 0x1be   :  { %v242_v32 = vpop.f32.mrf.mxu1 }
 0x1bf   :  { %v2368_v34 = vpack.c.bf16 %v251_v31, %v248_v30  ;;  %v243_v35 = vadd.f32 %v242_v32, %v185_v27 }
 0x1c1   :  { %v254_v36 = vpack.c.bf16 %v243_v35, %v240_v33  ;;  %260 = vrot.lane.b32.xlu0 %v2368_v34, %s2261_s0 }
 0x1c3   :  { %1968 = vmatprep.mubr.msk.bf16.mxu1 %vm198_vm1, %v254_v36 }
 0x1c5   :  { %258 = vrot.lane.b32.xlu0 %v254_v36, %s2261_s0 }
 0x233   :  { %v261_v37 = vpop.permute.xlu0 %260 }
 0x234   :  { %v272_v38 = vsel %vm198_vm1, %v261_v37, 0  ;;  %2088 = vmatprep.subr.msk.bf16.mxu1 %vm198_vm1, %v261_v37 }
 0x235   :  { %1965 = vmatpush3.bf16.xpose.msra.mxu1 %v272_v38 }
 0x237   :  { %v259_v39 = vpop.permute.xlu0 %258 }
 0x238   :  { %2089 = vmatprep.subr.msk.bf16.mxu1 %vm198_vm1, %v259_v39  ;;  %v269_v40 = vsel %vm198_vm1, %v259_v39, 0 }
 0x23d   :  { %1967 = vmatpush3.bf16.xpose.msra.mxu1 %v269_v40 }
 0x244   :  { %1969 = vmatmul.mubr.msk.bf16.vlgmr.msra.gmra.mxu1 %vm198_vm1, %v2368_v34 }
 0x304   :  { %v1970_v42 = vpop.f32.mrf.mxu1 }
 0x305   :  { %v317_v44 = vadd.f32 %v1970_v42, %v2383_v41 }
 0x306   :  { %v308_v45 = vpop.f32.mrf.mxu1 }
 0x307   :  { %v309_v46 = vadd.f32 %v308_v45, %v2388_v43  ;;  %v329_v47 = vsel %vm198_vm1, %v317_v44, -inf }
 0x308   :  { %330 = vmax.xlane.f32.xlu0 %v329_v47  ;;  %v1971_v48 = vpop.f32.mrf.mxu1 }
 0x309   :  { %v323_v50 = vsel %vm198_vm1, %v309_v46, -inf  ;;  %v320_v54 = vadd.f32 %v1971_v48, %v2402_v51  ;;  %v434_v48 = vsub.s32 1, %v2359_v23 }
 0x30a   :  { %v311_v52 = vpop.f32.mrf.mxu1  ;;  %324 = vmax.xlane.f32.xlu1 %v323_v50 }
 0x30b   :  { %v312_v53 = vadd.f32 %v311_v52, %v2396_v49  ;;  %v332_v56 = vsel %vm198_vm1, %v320_v54, -inf  ;;  %v435_v50 = vrot.slane %v2364_v25, %v434_v48 }
 0x30d   :  { %v326_v55 = vsel %vm198_vm1, %v312_v53, -inf }
 0x30e   :  { %327 = vmax.xlane.f32.xlu1 %v326_v55 }
 0x312   :  { %333 = vmax.xlane.f32.xlu1 %v332_v56 }
 0x31e   :  { %369 = vrot.lane.b32.xlu0 %v254_v36, %s2262_s7 }
 0x391   :  { %v331_v57 = vpop.xlane.xlu0 %330 }
 0x392   :  { %v337_v58 = vsub.f32 %v317_v44, %v331_v57 }
 0x393   :  { %v325_v59 = vpop.xlane.xlu1 %324 }
 0x394   :  { %v343_v60 = vmul.f32 1.442695, %v337_v58  ;;  %v335_v61 = vsub.f32 %v309_v46, %v325_v59 }
 0x395   :  { %v370_v29 = vpop.permute.xlu0 %369 }
 0x396   :  { %2133 = vpow2.f32 %v343_v60  ;;  %v339_v62 = vmul.f32 1.442695, %v335_v61 }
 0x397   :  { %v328_v63 = vpop.xlane.xlu1 %327 }
 0x398   :  { %2135 = vpow2.f32 %v339_v62  ;;  %v336_v0 = vsub.f32 %v312_v53, %v328_v63 }
 0x39a   :  { %v341_v4 = vmul.f32 1.442695, %v336_v0 }
 0x39b   :  { %v334_v1 = vpop.xlane.xlu1 %333 }
 0x39c   :  { %v338_v2 = vsub.f32 %v320_v54, %v334_v1 }
 0x39e   :  { %v345_v8 = vmul.f32 1.442695, %v338_v2 }
 0x3a0   :  { %2137 = vpow2.f32 %v345_v8 }
 0x3a1   :  { %2139 = vpow2.f32 %v341_v4 }
 0x3a3   :  { %v2134_v9 = vpop.eup %2133 }
 0x3a4   :  { %v353_v10 = vsel %vm198_vm1, %v2134_v9, 0.0 }
 0x3a5   :  { %v2136_v11 = vpop.eup %2135  ;;  %354 = vadd.xlane.f32.xlu1 %v353_v10 }
 0x3a6   :  { %v347_v12 = vsel %vm198_vm1, %v2136_v11, 0.0 }
 0x3a9   :  { %348 = vadd.xlane.f32.xlu1 %v347_v12  ;;  %v2109_v12 = vld [vmem:[%s2812_s4 + $0x20] ss:$12 sps:$4 sm:$0xff]  }
 0x3aa   :  { %1988 = vmatprep.subr.bf16.mxu1 %v2109_v12 }
 0x3ab   :  { %1989 = vmatpush3.bf16.msra.mxu1 %v2109_v12 }
 0x3ad   :  { %v2138_v13 = vpop.eup %2137 }
 0x3ae   :  { %v356_v14 = vsel %vm198_vm1, %v2138_v13, 0.0  ;;  %v2140_v16 = vpop.eup %2139 }
 0x3af   :  { %357 = vadd.xlane.f32.xlu1 %v356_v14  ;;  %v350_v20 = vsel %vm198_vm1, %v2140_v16, 0.0 }
 0x3b3   :  { %351 = vadd.xlane.f32.xlu1 %v350_v20 }
 0x3c4   :  { %371 = vrot.lane.b32.xlu1 %v2368_v34, %s2262_s7 }
 0x3c8   :  { %438 = vrot.lane.b32.xlu1 %v2334_v6, %s2263_s1 }
 0x3cc   :  { %436 = vrot.lane.b32.xlu1 %v2341_v7, %s2263_s1 }
 0x42e   :  { %v355_v21 = vpop.xlane.xlu1 %354 }
 0x432   :  { %v349_v22 = vpop.xlane.xlu1 %348 }
 0x438   :  { %v358_v26 = vpop.xlane.xlu1 %357 }
 0x439   :  { %2141 = vrcp.f32 %v358_v26 }
 0x43a   :  { %2143 = vrcp.f32 %v349_v22 }
 0x43b   :  { %2145 = vrcp.f32 %v355_v21 }
 0x43c   :  { %v352_v27 = vpop.xlane.xlu1 %351 }
 0x43d   :  { %2147 = vrcp.f32 %v352_v27 }
 0x440   :  { %v372_v28 = vpop.permute.xlu1 %371 }
 0x441   :  { %1972 = vmatprep.subr.bf16.mxu0 %v372_v28 }
 0x442   :  { %1973 = vmatpush3.bf16.msra.mxu0 %v372_v28 }
 0x443   :  { %1974 = vmatprep.subr.bf16.mxu0 %v370_v29 }
 0x444   :  { %v439_v30 = vpop.permute.xlu1 %438 }
 0x446   :  { %1975 = vmatpush3.bf16.msra.mxu0 %v370_v29  ;;  %v2142_v31 = vpop.eup %2141 }
 0x447   :  { %1980 = vmatprep.subr.bf16.mxu0 %v439_v30  ;;  %v2144_v6 = vpop.eup %2143  ;;  %v366_v33 = vmul.f32 %v2142_v31, %v2138_v13  ;;  %v2110_v13 = vld [vmem:[%s2812_s4 + $0x8] ss:$12 sps:$4 sm:$0xff]  }
 0x448   :  { %v2146_v32 = vpop.eup %2145  ;;  %v363_v34 = vmul.f32 %v2144_v6, %v2136_v11  ;;  %v437_v39 = vpop.permute.xlu1 %436  ;;  %1990 = vmatprep.subr.bf16.mxu1 %v2110_v13 }
 0x449   :  { %v365_v36 = vmul.f32 %v2146_v32, %v2134_v9  ;;  %1991 = vmatpush3.bf16.msra.mxu1 %v2110_v13 }
 0x44a   :  { %v2148_v7 = vpop.eup %2147 }
 0x44b   :  { %v364_v35 = vmul.f32 %v2148_v7, %v2140_v16  ;;  %v368_v38 = vpack.c.bf16 %v366_v33, %v365_v36 }
 0x44d   :  { %v367_v37 = vpack.c.bf16 %v364_v35, %v363_v34 }
 0x44f   :  { %1976 = vmatprep.mubr.msk.bf16.mxu0 %vm198_vm1, %v367_v37 }
 0x450   :  { %1977 = vmatmul.mubr.msk.bf16.vlgmr.msra.gmra.mxu0 %vm198_vm1, %v368_v38 }
 0x451   :  { %1981 = vmatpush3.bf16.msra.mxu0 %v439_v30 }
 0x452   :  { %1982 = vmatprep.subr.bf16.mxu0 %v437_v39 }
 0x455   :  { %1983 = vmatpush3.bf16.msra.mxu0 %v437_v39 }
 0x510   :  { %v1978_v40 = vpop.f32.mrf.mxu0 }
 0x512   :  { %v415_v42 = vpop.f32.mrf.mxu0 }
 0x514   :  { %v1979_v44 = vpop.f32.mrf.mxu0 }
 0x515   :  { %v431_v47 = vpack.c.bf16 %v1979_v44, %v1978_v40 }
 0x516   :  { %v418_v45 = vpop.f32.mrf.mxu0 }
 0x517   :  { %v430_v46 = vpack.c.bf16 %v418_v45, %v415_v42 }
 0x519   :  { %1984 = vmatprep.mubr.msk.bf16.mxu0 %vm198_vm1, %v430_v46 }
 0x51a   :  { %1985 = vmatmul.mubr.msk.bf16.vlgmr.msra.gmra.mxu0 %vm198_vm1, %v431_v47 }
 0x5da   :  { %v1986_v52 = vpop.f32.mrf.mxu0 }
 0x5db   :  { %v491_v53 = vadd.f32 %v1986_v52, %v435_v50  ;;  %v564_v52 = vsub.s32 2, %v2359_v23 }
 0x5dc   :  { %v482_v54 = vpop.f32.mrf.mxu0 }
 0x5dd   :  { %v2428_v55 = vadd.f32 %v491_v53, %v2351_v19  ;;  %v483_v56 = vadd.f32 %v482_v54, %v435_v50 }
 0x5de   :  { %v1987_v57 = vpop.f32.mrf.mxu0 }
 0x5df   :  { %v2431_v58 = vadd.f32 %v483_v56, %v2347_v17  ;;  %v494_v59 = vadd.f32 %v1987_v57, %v435_v50  ;;  %v507_v60 = vsel %vm198_vm1, %v2428_v55, 0.0  ;;  %v520_v4 = vmul.f32 %v2428_v55, %v2428_v55 }
 0x5e0   :  { %508 = vadd.xlane.f32.xlu1 %v507_v60  ;;  %v485_v61 = vpop.f32.mrf.mxu0  ;;  %v565_v57 = vrot.slane %v2364_v25, %v564_v52 }
 0x5e1   :  { %v2436_v62 = vadd.f32 %v494_v59, %v2345_v15  ;;  %v486_v63 = vadd.f32 %v485_v61, %v435_v50  ;;  %v501_v17 = vsel %vm198_vm1, %v2431_v58, 0.0  ;;  %v518_v1 = vmul.f32 %v2431_v58, %v2431_v58 }
 0x5e2   :  { %v528_v9 = vsel %vm198_vm1, %v520_v4, 0.0  ;;  %v572_v59 = vsub.s32 3, %v2359_v23 }
 0x5e3   :  { %v2439_v0 = vadd.f32 %v486_v63, %v2349_v18  ;;  %v510_v19 = vsel %vm198_vm1, %v2436_v62, 0.0  ;;  %v522_v15 = vsel %vm198_vm1, %v518_v1, 0.0  ;;  %v521_v10 = vmul.f32 %v2436_v62, %v2436_v62 }
 0x5e4   :  { %511 = vadd.xlane.f32.xlu0 %v510_v19  ;;  %502 = vadd.xlane.f32.xlu1 %v501_v17 }
 0x5e5   :  { %v504_v2 = vsel %vm198_vm1, %v2439_v0, 0.0  ;;  %v519_v18 = vmul.f32 %v2439_v0, %v2439_v0  ;;  %v531_v11 = vsel %vm198_vm1, %v521_v10, 0.0 }
 0x5e7   :  { %v525_v8 = vsel %vm198_vm1, %v519_v18, 0.0 }
 0x5e8   :  { %505 = vadd.xlane.f32.xlu0 %v504_v2  ;;  %523 = vadd.xlane.f32.xlu1 %v522_v15 }
 0x5ec   :  { %526 = vadd.xlane.f32.xlu0 %v525_v8  ;;  %529 = vadd.xlane.f32.xlu1 %v528_v9 }
 0x5f0   :  { %532 = vadd.xlane.f32.xlu0 %v531_v11 }
 0x669   :  { %v509_v14 = vpop.xlane.xlu1 %508 }
 0x66a   :  { %v516_v22 = vmul.f32 0.03125, %v509_v14  ;;  %v2111_v14 = vld [vmem:[%s2812_s4 + $0x78] ss:$12 sps:$4 sm:$0xff]  }
 0x66b   :  { %1996 = vmatprep.subr.bf16.mxu0 %v2111_v14 }
 0x66c   :  { %v540_v6 = vmul.f32 %v516_v22, %v516_v22  ;;  %v548_v63 = vsub.f32 %v2428_v55, %v516_v22  ;;  %1997 = vmatpush3.bf16.msra.mxu0 %v2111_v14  ;;  %v582_v22 = vsub.s32 4, %v2359_v23 }
 0x66d   :  { %v512_v16 = vpop.xlane.xlu0 %511  ;;  %v503_v20 = vpop.xlane.xlu1 %502 }
 0x66e   :  { %v514_v21 = vmul.f32 0.03125, %v503_v20  ;;  %v517_v32 = vmul.f32 0.03125, %v512_v16  ;;  %v2112_v16 = vld [vmem:[%s2812_s4 + $0x60] ss:$12 sps:$4 sm:$0xff]   ;;  %v2113_v20 = vld [vmem:[%s2812_s4 + $0x48] ss:$12 sps:$4 sm:$0xff]  }
 0x66f   :  { %1998 = vmatprep.subr.bf16.mxu0 %v2112_v16 }
 0x670   :  { %v538_v28 = vmul.f32 %v514_v21, %v514_v21  ;;  %v541_v42 = vmul.f32 %v517_v32, %v517_v32  ;;  %v546_v53 = vsub.f32 %v2431_v58, %v514_v21  ;;  %v573_v58 = vrot.slane %v2364_v25, %v572_v59  ;;  %1999 = vmatpush3.bf16.msra.mxu0 %v2112_v16  ;;  %v2114_v21 = vld [vmem:[%s2812_s4 + $0x30] ss:$12 sps:$4 sm:$0xff]  }
 0x671   :  { %v506_v26 = vpop.xlane.xlu0 %505  ;;  %v524_v27 = vpop.xlane.xlu1 %523  ;;  %v549_v15 = vsub.f32 %v2436_v62, %v517_v32  ;;  %2000 = vmatprep.subr.bf16.mxu0 %v2113_v20 }
 0x672   :  { %v515_v29 = vmul.f32 0.03125, %v506_v26  ;;  %v534_v30 = vmul.f32 0.03125, %v524_v27  ;;  %v583_v26 = vrot.slane %v2364_v25, %v582_v22 }
 0x674   :  { %v542_v31 = vsub.f32 %v534_v30, %v538_v28  ;;  %v539_v34 = vmul.f32 %v515_v29, %v515_v29  ;;  %v547_v60 = vsub.f32 %v2439_v0, %v515_v29  ;;  %2001 = vmatpush3.bf16.msra.mxu0 %v2113_v20 }
 0x675   :  { %v527_v7 = vpop.xlane.xlu0 %526  ;;  %v530_v33 = vpop.xlane.xlu1 %529  ;;  %2002 = vmatprep.subr.bf16.mxu0 %v2114_v21 }
 0x676   :  { %v550_v35 = vadd.f32 1e-12, %v542_v31  ;;  %v535_v36 = vmul.f32 0.03125, %v527_v7  ;;  %v536_v37 = vmul.f32 0.03125, %v530_v33 }
 0x678   :  { %2149 = vrsqrt.f32 %v550_v35  ;;  %v543_v38 = vsub.f32 %v535_v36, %v539_v34  ;;  %v544_v39 = vsub.f32 %v536_v37, %v540_v6  ;;  %2003 = vmatpush3.bf16.msra.mxu0 %v2114_v21 }
 0x679   :  { %v533_v40 = vpop.xlane.xlu0 %532 }
 0x67a   :  { %v551_v44 = vadd.f32 1e-12, %v543_v38  ;;  %v552_v45 = vadd.f32 1e-12, %v544_v39  ;;  %v537_v46 = vmul.f32 0.03125, %v533_v40 }
 0x67c   :  { %2151 = vrsqrt.f32 %v551_v44  ;;  %v545_v47 = vsub.f32 %v537_v46, %v541_v42 }
 0x67d   :  { %2153 = vrsqrt.f32 %v552_v45 }
 0x67e   :  { %v553_v50 = vadd.f32 1e-12, %v545_v47 }
 0x680   :  { %2155 = vrsqrt.f32 %v553_v50 }
 0x685   :  { %v2150_v54 = vpop.eup %2149 }
 0x686   :  { %v558_v56 = vmul.f32 %v2150_v54, %v546_v53 }
 0x688   :  { %v566_v1 = vmul.f32 %v565_v57, %v558_v56 }
 0x689   :  { %v2152_v61 = vpop.eup %2151 }
 0x68a   :  { %v2154_v19 = vpop.eup %2153  ;;  %v559_v17 = vmul.f32 %v2152_v61, %v547_v60  ;;  %v2477_v9 = vadd.f32 %v573_v58, %v566_v1 }
 0x68b   :  { %v560_v2 = vmul.f32 %v2154_v19, %v548_v63 }
 0x68c   :  { %v567_v18 = vmul.f32 %v565_v57, %v559_v17 }
 0x68d   :  { %v2156_v4 = vpop.eup %2155  ;;  %v568_v0 = vmul.f32 %v565_v57, %v560_v2 }
 0x68e   :  { %v561_v8 = vmul.f32 %v2156_v4, %v549_v15  ;;  %v2479_v10 = vadd.f32 %v573_v58, %v567_v18 }
 0x68f   :  { %v2484_v12 = vadd.f32 %v573_v58, %v568_v0 }
 0x690   :  { %v578_v55 = vpack.c.bf16 %v2479_v10, %v2477_v9  ;;  %v569_v11 = vmul.f32 %v565_v57, %v561_v8 }
 0x692   :  { %1992 = vmatprep.mubr.msk.bf16.mxu1 %vm198_vm1, %v578_v55  ;;  %v2486_v13 = vadd.f32 %v573_v58, %v569_v11 }
 0x694   :  { %v579_v62 = vpack.c.bf16 %v2486_v13, %v2484_v12 }
 0x696   :  { %1993 = vmatmul.mubr.msk.bf16.vlgmr.msra.gmra.mxu1 %vm198_vm1, %v579_v62 }
 0x756   :  { %v1994_v27 = vpop.f32.mrf.mxu1 }
 0x757   :  { %v645_v28 = vadd.f32 %v1994_v27, %v583_v26 }
 0x758   :  { %v636_v29 = vpop.f32.mrf.mxu1 }
 0x759   :  { %v653_v30 = vmul.f32 %v645_v28, %v645_v28  ;;  %v637_v31 = vadd.f32 %v636_v29, %v583_v26 }
 0x75a   :  { %v1995_v6 = vpop.f32.mrf.mxu1 }
 0x75b   :  { %v657_v32 = vmul.f32 %v653_v30, %v645_v28  ;;  %v651_v7 = vmul.f32 %v637_v31, %v637_v31  ;;  %v648_v33 = vadd.f32 %v1995_v6, %v583_v26 }
 0x75c   :  { %v639_v34 = vpop.f32.mrf.mxu1 }
 0x75d   :  { %v661_v35 = vmul.f32 0.044715, %v657_v32  ;;  %v655_v36 = vmul.f32 %v651_v7, %v637_v31  ;;  %v654_v37 = vmul.f32 %v648_v33, %v648_v33  ;;  %v640_v38 = vadd.f32 %v639_v34, %v583_v26 }
 0x75e   :  { %v691_v26 = vsub.s32 5, %v2359_v23 }
 0x75f   :  { %v665_v39 = vadd.f32 %v661_v35, %v645_v28  ;;  %v659_v40 = vmul.f32 0.044715, %v655_v36  ;;  %v658_v42 = vmul.f32 %v654_v37, %v648_v33  ;;  %v652_v44 = vmul.f32 %v640_v38, %v640_v38 }
 0x760   :  { %v692_v27 = vrot.slane %v2364_v25, %v691_v26 }
 0x761   :  { %v669_v45 = vmul.f32 0.7978846, %v665_v39  ;;  %v663_v46 = vadd.f32 %v659_v40, %v637_v31  ;;  %v662_v47 = vmul.f32 0.044715, %v658_v42  ;;  %v656_v50 = vmul.f32 %v652_v44, %v640_v38 }
 0x763   :  { %v667_v53 = vmul.f32 0.7978846, %v663_v46  ;;  %v666_v54 = vadd.f32 %v662_v47, %v648_v33  ;;  %v660_v56 = vmul.f32 0.044715, %v656_v50  ;;  %2157 = vtanh.f32 %v669_v45  ;;  %v2115_v50 = vld [vmem:[%s2812_s4 + $0x1c] ss:$12 sps:$4 sm:$0xff]  }
 0x764   :  { %2008 = vmatprep.subr.bf16.mxu1 %v2115_v50 }
 0x765   :  { %2159 = vtanh.f32 %v667_v53  ;;  %v670_v57 = vmul.f32 0.7978846, %v666_v54  ;;  %v664_v60 = vadd.f32 %v660_v56, %v640_v38  ;;  %v2116_v53 = vld [vmem:[%s2812_s4 + $0x4] ss:$12 sps:$4 sm:$0xff]   ;;  %2009 = vmatpush3.bf16.msra.mxu1 %v2115_v50  ;;  %v2554_v54 = vld [vmem:[%s2811_s3 + $0x38] sm:$0xff]  }
 0x766   :  { %2010 = vmatprep.subr.bf16.mxu1 %v2116_v53 }
 0x767   :  { %2161 = vtanh.f32 %v670_v57  ;;  %v668_v61 = vmul.f32 0.7978846, %v664_v60 }
 0x769   :  { %2163 = vtanh.f32 %v668_v61  ;;  %2011 = vmatpush3.bf16.msra.mxu1 %v2116_v53 }
 0x76a   :  { %2016 = vmatprep.subr.bf16.mxu1 %v2554_v54 }
 0x770   :  { %v2158_v63 = vpop.eup %2157 }
 0x771   :  { %v677_v58 = vadd.f32 1.0, %v2158_v63 }
 0x772   :  { %v2160_v19 = vpop.eup %2159 }
 0x773   :  { %v675_v17 = vadd.f32 1.0, %v2160_v19  ;;  %v681_v0 = vmul.f32 0.5, %v677_v58 }
 0x774   :  { %v2162_v1 = vpop.eup %2161 }
 0x775   :  { %v678_v2 = vadd.f32 1.0, %v2162_v1  ;;  %v679_v18 = vmul.f32 0.5, %v675_v17  ;;  %v685_v16 = vmul.f32 %v681_v0, %v645_v28 }
 0x776   :  { %v2164_v15 = vpop.eup %2163 }
 0x777   :  { %v682_v4 = vmul.f32 0.5, %v678_v2  ;;  %v676_v8 = vadd.f32 1.0, %v2164_v15  ;;  %v683_v62 = vmul.f32 %v679_v18, %v637_v31 }
 0x779   :  { %v680_v55 = vmul.f32 0.5, %v676_v8  ;;  %v686_v11 = vmul.f32 %v682_v4, %v648_v33 }
 0x77b   :  { %v684_v14 = vmul.f32 %v680_v55, %v640_v38  ;;  %v688_v21 = vpack.c.bf16 %v686_v11, %v685_v16 }
 0x77d   :  { %v687_v20 = vpack.c.bf16 %v684_v14, %v683_v62 }
 0x77f   :  { %2004 = vmatprep.mubr.msk.bf16.mxu0 %vm124_vm0, %v687_v20 }
 0x780   :  { %2005 = vmatmul.mubr.msk.bf16.vlgmr.msra.gmra.mxu0 %vm124_vm0, %v688_v21 }
 0x840   :  { %v2006_v29 = vpop.f32.mrf.mxu0 }
 0x841   :  { %v766_v30 = vadd.f32 %v2006_v29, %v692_v27 }
 0x842   :  { %v757_v6 = vpop.f32.mrf.mxu0 }
 0x843   :  { %v2514_v32 = vadd.f32 %v766_v30, %v2484_v12  ;;  %v758_v31 = vadd.f32 %v757_v6, %v692_v27 }
 0x844   :  { %v2007_v28 = vpop.f32.mrf.mxu0 }
 0x845   :  { %v2517_v7 = vadd.f32 %v758_v31, %v2477_v9  ;;  %v769_v33 = vadd.f32 %v2007_v28, %v692_v27  ;;  %v782_v34 = vsel %vm198_vm1, %v2514_v32, 0.0  ;;  %v794_v42 = vmul.f32 %v2514_v32, %v2514_v32 }
 0x846   :  { %783 = vadd.xlane.f32.xlu1 %v782_v34  ;;  %v760_v35 = vpop.f32.mrf.mxu0 }
 0x847   :  { %v2522_v36 = vadd.f32 %v769_v33, %v2486_v13  ;;  %v761_v37 = vadd.f32 %v760_v35, %v692_v27  ;;  %v776_v9 = vsel %vm198_vm1, %v2517_v7, 0.0  ;;  %v792_v39 = vmul.f32 %v2517_v7, %v2517_v7 }
 0x848   :  { %v802_v45 = vsel %vm198_vm1, %v794_v42, 0.0  ;;  %v838_v33 = vsub.s32 6, %v2359_v23 }
 0x849   :  { %v2525_v38 = vadd.f32 %v761_v37, %v2479_v10  ;;  %v785_v12 = vsel %vm198_vm1, %v2522_v36, 0.0  ;;  %v796_v13 = vsel %vm198_vm1, %v792_v39, 0.0  ;;  %v795_v46 = vmul.f32 %v2522_v36, %v2522_v36 }
 0x84a   :  { %786 = vadd.xlane.f32.xlu0 %v785_v12  ;;  %777 = vadd.xlane.f32.xlu1 %v776_v9  ;;  %v839_v12 = vrot.slane %v2364_v25, %v838_v33  ;;  %v846_v9 = vsub.s32 7, %v2359_v23  ;;  %v944_v23 = vld [vmem:[#allocation4 + $0x18] sm:$0xff] }
 0x84b   :  { %v779_v40 = vsel %vm198_vm1, %v2525_v38, 0.0  ;;  %v793_v10 = vmul.f32 %v2525_v38, %v2525_v38  ;;  %v805_v47 = vsel %vm198_vm1, %v795_v46, 0.0 }
 0x84d   :  { %v799_v44 = vsel %vm198_vm1, %v793_v10, 0.0 }
 0x84e   :  { %780 = vadd.xlane.f32.xlu0 %v779_v40  ;;  %797 = vadd.xlane.f32.xlu1 %v796_v13 }
 0x852   :  { %800 = vadd.xlane.f32.xlu0 %v799_v44  ;;  %803 = vadd.xlane.f32.xlu1 %v802_v45 }
 0x856   :  { %806 = vadd.xlane.f32.xlu0 %v805_v47 }
 0x8cf   :  { %v784_v56 = vpop.xlane.xlu1 %783 }
 0x8d0   :  { %v790_v63 = vmul.f32 0.03125, %v784_v56 }
 0x8d2   :  { %v814_v18 = vmul.f32 %v790_v63, %v790_v63  ;;  %v822_v13 = vsub.f32 %v2514_v32, %v790_v63 }
 0x8d3   :  { %v787_v57 = vpop.xlane.xlu0 %786  ;;  %v778_v60 = vpop.xlane.xlu1 %777 }
 0x8d4   :  { %v788_v61 = vmul.f32 0.03125, %v778_v60  ;;  %v791_v4 = vmul.f32 0.03125, %v787_v57 }
 0x8d6   :  { %v812_v1 = vmul.f32 %v788_v61, %v788_v61  ;;  %v815_v27 = vmul.f32 %v791_v4, %v791_v4  ;;  %v820_v34 = vsub.f32 %v2517_v7, %v788_v61  ;;  %v847_v7 = vrot.slane %v2364_v25, %v846_v9  ;;  %v2118_v25 = vld [vmem:[%s2811_s3 + $0x30] sm:$0xff]  }
 0x8d7   :  { %v781_v19 = vpop.xlane.xlu0 %780  ;;  %v798_v17 = vpop.xlane.xlu1 %797  ;;  %v823_v46 = vsub.f32 %v2522_v36, %v791_v4  ;;  %v2119_v36 = vld [vmem:[%s2811_s3 + $0x28] sm:$0xff]  }
 0x8d8   :  { %v789_v58 = vmul.f32 0.03125, %v781_v19  ;;  %v808_v2 = vmul.f32 0.03125, %v798_v17  ;;  %v2120_v17 = vld [vmem:[%s2811_s3 + $0x20] sm:$0xff]  }
 0x8da   :  { %v816_v15 = vsub.f32 %v808_v2, %v812_v1  ;;  %v813_v55 = vmul.f32 %v789_v58, %v789_v58  ;;  %v821_v39 = vsub.f32 %v2525_v38, %v789_v58  ;;  %v77_v1 = vld [vmem:[#allocation4 + $0x8] sm:$0xff] }
 0x8db   :  { %v801_v8 = vpop.xlane.xlu0 %800  ;;  %v804_v0 = vpop.xlane.xlu1 %803 }
 0x8dc   :  { %v824_v11 = vadd.f32 1e-12, %v816_v15  ;;  %v809_v62 = vmul.f32 0.03125, %v801_v8  ;;  %v810_v14 = vmul.f32 0.03125, %v804_v0 }
 0x8de   :  { %2165 = vrsqrt.f32 %v824_v11  ;;  %v817_v16 = vsub.f32 %v809_v62, %v813_v55  ;;  %v818_v20 = vsub.f32 %v810_v14, %v814_v18  ;;  %v958_v14 = vld [vmem:[#allocation2 + $0x38] sm:$0xff] }
 0x8df   :  { %v807_v21 = vpop.xlane.xlu0 %806 }
 0x8e0   :  { %v825_v29 = vadd.f32 1e-12, %v817_v16  ;;  %v826_v30 = vadd.f32 1e-12, %v818_v20  ;;  %v811_v6 = vmul.f32 0.03125, %v807_v21  ;;  %v955_v16 = vld [vmem:[#allocation2 + $0x20] sm:$0xff] }
 0x8e1   :  { %v956_v21 = vld [vmem:[#allocation2 + $0x28] sm:$0xff] }
 0x8e2   :  { %2167 = vrsqrt.f32 %v825_v29  ;;  %v819_v31 = vsub.f32 %v811_v6, %v815_v27  ;;  %v957_v27 = vld [vmem:[#allocation2 + $0x30] sm:$0xff] }
 0x8e3   :  { %2169 = vrsqrt.f32 %v826_v30 }
 0x8e4   :  { %v827_v28 = vadd.f32 1e-12, %v819_v31 }
 0x8e6   :  { %2171 = vrsqrt.f32 %v827_v28 }
 0x8eb   :  { %v2166_v35 = vpop.eup %2165 }
 0x8ec   :  { %v832_v37 = vmul.f32 %v2166_v35, %v820_v34 }
 0x8ee   :  { %v840_v44 = vmul.f32 %v839_v12, %v832_v37  ;;  %v2626_v37 = vld [vmem:[#allocation4 + $0x10] sm:$0xff] }
 0x8ef   :  { %v2168_v40 = vpop.eup %2167 }
 0x8f0   :  { %v2170_v10 = vpop.eup %2169  ;;  %v833_v42 = vmul.f32 %v2168_v40, %v821_v39  ;;  %v848_v56 = vadd.f32 %v847_v7, %v840_v44  ;;  %v1037_v39 = vrot.slane %v2626_v37, %v2362_v24 }
 0x8f1   :  { %v834_v45 = vmul.f32 %v2170_v10, %v822_v13 }
 0x8f2   :  { %v841_v47 = vmul.f32 %v839_v12, %v833_v42 }
 0x8f3   :  { %v2172_v50 = vpop.eup %2171  ;;  %v842_v60 = vmul.f32 %v839_v12, %v834_v45 }
 0x8f4   :  { %v835_v53 = vmul.f32 %v2172_v50, %v823_v46  ;;  %v849_v57 = vadd.f32 %v847_v7, %v841_v47 }
 0x8f5   :  { %v850_v32 = vadd.f32 %v847_v7, %v842_v60 }
 0x8f6   :  { %v852_v38 = vpack.c.bf16 %v849_v57, %v848_v56  ;;  %v843_v61 = vmul.f32 %v839_v12, %v835_v53 }
 0x8f8   :  { %2012 = vmatprep.mubr.msk.bf16.mxu1 %vm198_vm1, %v852_v38  ;;  %v851_v63 = vadd.f32 %v847_v7, %v843_v61 }
 0x8fa   :  { %v853_v19 = vpack.c.bf16 %v851_v63, %v850_v32 }
 0x8fc   :  { %2013 = vmatmul.mubr.msk.bf16.vlgmr.msra.gmra.mxu1 %vm198_vm1, %v853_v19 }
 0x8fd   :  { %2017 = vmatpush3.bf16.msra.mxu1 %v2554_v54  ;;  %2024 = vmatprep.mubr.msk.bf16.mxu1 %vm124_vm0, %v2317_v3  ;;  %v2588_v3 = vld [vmem:[%s2812_s4 + $0xa8] ss:$12 sps:$4 sm:$0xff]   ;;  %v2595_v54 = vld [vmem:[%s2812_s4 + $0x90] ss:$12 sps:$4 sm:$0xff]  }
 0x8fe   :  { %2018 = vmatprep.subr.bf16.mxu1 %v2118_v25  ;;  %2028 = vmatprep.subr.bf16.mxu0 %v2588_v3 }
 0x8ff   :  { %2029 = vmatpush3.bf16.msra.mxu0 %v2588_v3 }
 0x900   :  { %2030 = vmatprep.subr.bf16.mxu0 %v2595_v54 }
 0x901   :  { %2019 = vmatpush3.bf16.msra.mxu1 %v2118_v25 }
 0x902   :  { %2020 = vmatprep.subr.bf16.mxu1 %v2119_v36 }
 0x903   :  { %2031 = vmatpush3.bf16.msra.mxu0 %v2595_v54 }
 0x905   :  { %2021 = vmatpush3.bf16.msra.mxu1 %v2119_v36 }
 0x906   :  { %2022 = vmatprep.subr.bf16.mxu1 %v2120_v17 }
 0x909   :  { %2023 = vmatpush3.bf16.msra.mxu1 %v2120_v17 }
 0x90c   :  { %2025 = vmatmul.mubr.msk.bf16.vlgmr.msra.gmra.mxu1 %vm124_vm0, %v2327_v5  ;;  %v857_v5 = vrot.slane %v77_v1, %v2362_v24 }
 0x9bc   :  { %v2014_v58 = vpop.f32.mrf.mxu1 }
 0x9bd   :  { %v915_v2 = vadd.f32 %v2014_v58, %v857_v5 }
 0x9be   :  { %v906_v15 = vpop.f32.mrf.mxu1 }
 0x9bf   :  { %923 = vst [vmem:[%s2814_s6 + $0x10] sm:$0xff] %v915_v2  ;;  %v907_v18 = vadd.f32 %v906_v15, %v857_v5 }
 0x9c0   :  { %v2015_v4 = vpop.f32.mrf.mxu1 }
 0x9c1   :  { %921 = vst [vmem:[%s2814_s6] sm:$0xff] %v907_v18  ;;  %v918_v8 = vadd.f32 %v2015_v4, %v857_v5 }
 0x9c2   :  { %v909_v0 = vpop.f32.mrf.mxu1 }
 0x9c3   :  { %924 = vst [vmem:[%s2814_s6 + $0x18] sm:$0xff] %v918_v8  ;;  %v910_v55 = vadd.f32 %v909_v0, %v857_v5 }
 0x9c5   :  { %922 = vst [vmem:[%s2814_s6 + $0x8] sm:$0xff] %v910_v55 }
 0x9cc   :  { %v2026_v11 = vpop.f32.mrf.mxu1 }
 0x9cd   :  { %v2618_v28 = vadd.f32 %v2026_v11, %v957_v27 }
 0x9ce   :  { %v1017_v62 = vpop.f32.mrf.mxu1 }
 0x9cf   :  { %v2614_v6 = vadd.f32 %v1017_v62, %v955_v16 }
 0x9d0   :  { %v2027_v20 = vpop.f32.mrf.mxu1 }
 0x9d1   :  { %v2612_v29 = vadd.f32 %v2027_v20, %v958_v14 }
 0x9d2   :  { %v1020_v30 = vpop.f32.mrf.mxu1 }
 0x9d3   :  { %v2616_v31 = vadd.f32 %v1020_v30, %v956_v21  ;;  %v1033_v35 = vpack.c.bf16 %v2612_v29, %v2618_v28 }
 0x9d5   :  { %v1032_v34 = vpack.c.bf16 %v2616_v31, %v2614_v6 }
 0x9d7   :  { %2032 = vmatprep.mubr.msk.bf16.mxu0 %vm198_vm1, %v1032_v34 }
 0x9d8   :  { %2033 = vmatmul.mubr.msk.bf16.vlgmr.msra.gmra.mxu0 %vm198_vm1, %v1033_v35 }
 0xa98   :  { %v2034_v12 = vpop.f32.mrf.mxu0 }
 0xa99   :  { %v1099_v10 = vadd.f32 %v2034_v12, %v1037_v39 }
 0xa9a   :  { %v1090_v40 = vpop.f32.mrf.mxu0 }
 0xa9b   :  { %v1091_v7 = vadd.f32 %v1090_v40, %v1037_v39 }
 0xa9c   :  { %v2035_v13 = vpop.f32.mrf.mxu0 }
 0xa9d   :  { %v1102_v42 = vadd.f32 %v2035_v13, %v1037_v39 }
 0xa9e   :  { %v1093_v44 = vpop.f32.mrf.mxu0 }
 0xa9f   :  { %v1106_v45 = vpack.c.bf16 %v1102_v42, %v1099_v10  ;;  %v1094_v46 = vadd.f32 %v1093_v44, %v1037_v39 }
 0xaa1   :  { %v1105_v47 = vpack.c.bf16 %v1094_v46, %v1091_v7  ;;  %1111 = vrot.lane.b32.xlu1 %v1106_v45, %s2261_s0 }
 0xaa3   :  { %1109 = vrot.lane.b32.xlu0 %v1105_v47, %s2261_s0  ;;  %2040 = vmatprep.mubr.msk.bf16.mxu0 %vm198_vm1, %v1105_v47 }
 0xb13   :  { %v1112_v50 = vpop.permute.xlu1 %1111 }
 0xb14   :  { %v1123_v53 = vsel %vm198_vm1, %v1112_v50, 0  ;;  %2090 = vmatprep.subr.msk.bf16.mxu0 %vm198_vm1, %v1112_v50 }
 0xb15   :  { %2037 = vmatpush3.bf16.xpose.msra.mxu0 %v1123_v53  ;;  %v1110_v56 = vpop.permute.xlu0 %1109 }
 0xb16   :  { %2091 = vmatprep.subr.msk.bf16.mxu0 %vm198_vm1, %v1110_v56  ;;  %v1120_v57 = vsel %vm198_vm1, %v1110_v56, 0 }
 0xb1d   :  { %2039 = vmatpush3.bf16.xpose.msra.mxu0 %v1120_v57 }
 0xb24   :  { %2041 = vmatmul.mubr.msk.bf16.vlgmr.msra.gmra.mxu0 %vm198_vm1, %v1106_v45 }
 0xbe4   :  { %v2042_v60 = vpop.f32.mrf.mxu0 }
 0xbe5   :  { %v1168_v63 = vadd.f32 %v2042_v60, %v2383_v41 }
 0xbe6   :  { %v1159_v38 = vpop.f32.mrf.mxu0 }
 0xbe7   :  { %v1160_v61 = vadd.f32 %v1159_v38, %v2388_v43  ;;  %v1180_v5 = vsel %vm198_vm1, %v1168_v63, -inf }
 0xbe8   :  { %v2043_v32 = vpop.f32.mrf.mxu0 }
 0xbe9   :  { %v1174_v19 = vsel %vm198_vm1, %v1160_v61, -inf  ;;  %v1171_v17 = vadd.f32 %v2043_v32, %v2402_v51 }
 0xbea   :  { %v1162_v25 = vpop.f32.mrf.mxu0  ;;  %1175 = vmax.xlane.f32.xlu1 %v1174_v19 }
 0xbeb   :  { %v1163_v36 = vadd.f32 %v1162_v25, %v2396_v49  ;;  %v1183_v58 = vsel %vm198_vm1, %v1171_v17, -inf  ;;  %v1286_v25 = vrot.slane %v2626_v37, %v434_v48 }
 0xbed   :  { %v1177_v1 = vsel %vm198_vm1, %v1163_v36, -inf }
 0xbee   :  { %1178 = vmax.xlane.f32.xlu0 %v1177_v1  ;;  %1181 = vmax.xlane.f32.xlu1 %v1180_v5 }
 0xbf2   :  { %1184 = vmax.xlane.f32.xlu0 %v1183_v58 }
 0xc73   :  { %v1176_v43 = vpop.xlane.xlu1 %1175 }
 0xc74   :  { %v1186_v2 = vsub.f32 %v1160_v61, %v1176_v43 }
 0xc76   :  { %v1190_v0 = vmul.f32 1.442695, %v1186_v2 }
 0xc77   :  { %v1179_v41 = vpop.xlane.xlu0 %1178  ;;  %v1182_v15 = vpop.xlane.xlu1 %1181 }
 0xc78   :  { %v1188_v18 = vsub.f32 %v1168_v63, %v1182_v15  ;;  %v1187_v4 = vsub.f32 %v1163_v36, %v1179_v41 }
 0xc7a   :  { %v1194_v8 = vmul.f32 1.442695, %v1188_v18  ;;  %v1192_v51 = vmul.f32 1.442695, %v1187_v4 }
 0xc7b   :  { %v1185_v49 = vpop.xlane.xlu0 %1184 }
 0xc7c   :  { %v1189_v55 = vsub.f32 %v1171_v17, %v1185_v49  ;;  %2173 = vpow2.f32 %v1194_v8 }
 0xc7d   :  { %2175 = vpow2.f32 %v1190_v0 }
 0xc7e   :  { %v1196_v11 = vmul.f32 1.442695, %v1189_v55 }
 0xc80   :  { %2177 = vpow2.f32 %v1196_v11 }
 0xc81   :  { %2179 = vpow2.f32 %v1192_v51 }
 0xc89   :  { %v2174_v62 = vpop.eup %2173 }
 0xc8a   :  { %v1204_v14 = vsel %vm198_vm1, %v2174_v62, 0.0  ;;  %v2176_v16 = vpop.eup %2175 }
 0xc8b   :  { %1205 = vadd.xlane.f32.xlu1 %v1204_v14  ;;  %v1198_v30 = vsel %vm198_vm1, %v2176_v16, 0.0 }
 0xc8d   :  { %v2178_v20 = vpop.eup %2177 }
 0xc8e   :  { %v1207_v21 = vsel %vm198_vm1, %v2178_v20, 0.0  ;;  %v2180_v27 = vpop.eup %2179 }
 0xc8f   :  { %1208 = vadd.xlane.f32.xlu0 %v1207_v21  ;;  %1199 = vadd.xlane.f32.xlu1 %v1198_v30  ;;  %v1201_v34 = vsel %vm198_vm1, %v2180_v27, 0.0 }
 0xc93   :  { %1202 = vadd.xlane.f32.xlu0 %v1201_v34 }
 0xca0   :  { %1222 = vrot.lane.b32.xlu1 %v1106_v45, %s2262_s7 }
 0xca4   :  { %1289 = vrot.lane.b32.xlu1 %v2588_v3, %s2263_s1 }
 0xca8   :  { %1287 = vrot.lane.b32.xlu1 %v2595_v54, %s2263_s1 }
 0xca9   :  { %1220 = vrot.lane.b32.xlu0 %v1105_v47, %s2262_s7 }
 0xd14   :  { %v1206_v35 = vpop.xlane.xlu1 %1205 }
 0xd18   :  { %v1209_v12 = vpop.xlane.xlu0 %1208  ;;  %v1200_v39 = vpop.xlane.xlu1 %1199 }
 0xd19   :  { %2181 = vrcp.f32 %v1209_v12 }
 0xd1a   :  { %2183 = vrcp.f32 %v1200_v39 }
 0xd1b   :  { %2185 = vrcp.f32 %v1206_v35 }
 0xd1c   :  { %v1203_v40 = vpop.xlane.xlu0 %1202  ;;  %v1223_v13 = vpop.permute.xlu1 %1222 }
 0xd1d   :  { %2187 = vrcp.f32 %v1203_v40  ;;  %2044 = vmatprep.subr.bf16.mxu1 %v1223_v13 }
 0xd1e   :  { %2045 = vmatpush3.bf16.msra.mxu1 %v1223_v13 }
 0xd20   :  { %v1221_v10 = vpop.permute.xlu0 %1220  ;;  %v1290_v42 = vpop.permute.xlu1 %1289 }
 0xd21   :  { %2046 = vmatprep.subr.bf16.mxu1 %v1221_v10 }
 0xd22   :  { %2047 = vmatpush3.bf16.msra.mxu1 %v1221_v10 }
 0xd23   :  { %2052 = vmatprep.subr.bf16.mxu1 %v1290_v42 }
 0xd24   :  { %v1288_v57 = vpop.permute.xlu1 %1287 }
 0xd26   :  { %v2182_v3 = vpop.eup %2181 }
 0xd27   :  { %v2184_v44 = vpop.eup %2183  ;;  %v1217_v45 = vmul.f32 %v2182_v3, %v2178_v20  ;;  %v2126_v20 = vld [vmem:[%s2812_s4 + $0x98] ss:$12 sps:$4 sm:$0xff]  }
 0xd28   :  { %v2186_v7 = vpop.eup %2185  ;;  %v1214_v46 = vmul.f32 %v2184_v44, %v2176_v16  ;;  %v2125_v16 = vld [vmem:[%s2812_s4 + $0xb0] ss:$12 sps:$4 sm:$0xff]  }
 0xd29   :  { %v1216_v50 = vmul.f32 %v2186_v7, %v2174_v62  ;;  %2060 = vmatprep.subr.bf16.mxu0 %v2125_v16 }
 0xd2a   :  { %v2188_v54 = vpop.eup %2187  ;;  %2061 = vmatpush3.bf16.msra.mxu0 %v2125_v16  ;;  %v2130_v16 = vld [vmem:[%s2812_s4 + $0xc0] ss:$12 sps:$4 sm:$0xff]  }
 0xd2b   :  { %v1215_v47 = vmul.f32 %v2188_v54, %v2180_v27  ;;  %v1219_v56 = vpack.c.bf16 %v1217_v45, %v1216_v50  ;;  %2062 = vmatprep.subr.bf16.mxu0 %v2126_v20 }
 0xd2d   :  { %v1218_v53 = vpack.c.bf16 %v1215_v47, %v1214_v46 }
 0xd2e   :  { %2063 = vmatpush3.bf16.msra.mxu0 %v2126_v20  ;;  %v1433_v20 = vrot.slane %v2626_v37, %v582_v22 }
 0xd2f   :  { %2048 = vmatprep.mubr.msk.bf16.mxu1 %vm198_vm1, %v1218_v53 }
 0xd30   :  { %2049 = vmatmul.mubr.msk.bf16.vlgmr.msra.gmra.mxu1 %vm198_vm1, %v1219_v56 }
 0xd31   :  { %2053 = vmatpush3.bf16.msra.mxu1 %v1290_v42 }
 0xd32   :  { %2054 = vmatprep.subr.bf16.mxu1 %v1288_v57 }
 0xd35   :  { %2055 = vmatpush3.bf16.msra.mxu1 %v1288_v57 }
 0xdf0   :  { %v2050_v60 = vpop.f32.mrf.mxu1 }
 0xdf2   :  { %v1266_v38 = vpop.f32.mrf.mxu1 }
 0xdf4   :  { %v2051_v61 = vpop.f32.mrf.mxu1 }
 0xdf5   :  { %v1282_v19 = vpack.c.bf16 %v2051_v61, %v2050_v60 }
 0xdf6   :  { %v1269_v32 = vpop.f32.mrf.mxu1 }
 0xdf7   :  { %v1281_v63 = vpack.c.bf16 %v1269_v32, %v1266_v38 }
 0xdf9   :  { %2056 = vmatprep.mubr.msk.bf16.mxu1 %vm198_vm1, %v1281_v63 }
 0xdfa   :  { %2057 = vmatmul.mubr.msk.bf16.vlgmr.msra.gmra.mxu1 %vm198_vm1, %v1282_v19 }
 0xeba   :  { %v2058_v36 = vpop.f32.mrf.mxu1 }
 0xebb   :  { %v1342_v17 = vadd.f32 %v2058_v36, %v1286_v25 }
 0xebc   :  { %v1333_v1 = vpop.f32.mrf.mxu1 }
 0xebd   :  { %v2664_v5 = vadd.f32 %v1342_v17, %v2618_v28  ;;  %v1334_v58 = vadd.f32 %v1333_v1, %v1286_v25  ;;  %v1415_v17 = vrot.slane %v2626_v37, %v564_v52 }
 0xebe   :  { %v2059_v43 = vpop.f32.mrf.mxu1 }
 0xebf   :  { %v2667_v2 = vadd.f32 %v1334_v58, %v2614_v6  ;;  %v1345_v41 = vadd.f32 %v2059_v43, %v1286_v25  ;;  %v1358_v15 = vsel %vm198_vm1, %v2664_v5, 0.0 }
 0xec0   :  { %1359 = vadd.xlane.f32.xlu0 %v1358_v15  ;;  %v1336_v18 = vpop.f32.mrf.mxu1 }
 0xec1   :  { %v1337_v4 = vadd.f32 %v1336_v18, %v1286_v25  ;;  %v1368_v48 = vmul.f32 %v2667_v2, %v2667_v2  ;;  %v2674_v8 = vadd.f32 %v1345_v41, %v2612_v29  ;;  %v1352_v6 = vsel %vm198_vm1, %v2667_v2, 0.0 }
 0xec2   :  { %v1370_v29 = vmul.f32 %v2664_v5, %v2664_v5 }
 0xec3   :  { %v2677_v28 = vadd.f32 %v1337_v4, %v2616_v31  ;;  %v1372_v0 = vsel %vm198_vm1, %v1368_v48, 0.0  ;;  %v1361_v55 = vsel %vm198_vm1, %v2674_v8, 0.0  ;;  %v1371_v62 = vmul.f32 %v2674_v8, %v2674_v8 }
 0xec4   :  { %1373 = vadd.xlane.f32.xlu1 %v1372_v0  ;;  %1353 = vadd.xlane.f32.xlu0 %v1352_v6  ;;  %v1378_v51 = vsel %vm198_vm1, %v1370_v29, 0.0  ;;  %v1423_v4 = vrot.slane %v2626_v37, %v572_v59 }
 0xec5   :  { %v1355_v49 = vsel %vm198_vm1, %v2677_v28, 0.0  ;;  %v1369_v31 = vmul.f32 %v2677_v28, %v2677_v28  ;;  %v1381_v14 = vsel %vm198_vm1, %v1371_v62, 0.0  ;;  %v2128_v62 = vld [vmem:[%s2812_s4 + $0xf0] ss:$12 sps:$4 sm:$0xff]  }
 0xec7   :  { %v1375_v11 = vsel %vm198_vm1, %v1369_v31, 0.0 }
 0xec8   :  { %1356 = vadd.xlane.f32.xlu1 %v1355_v49  ;;  %1362 = vadd.xlane.f32.xlu0 %v1361_v55 }
 0xecc   :  { %1379 = vadd.xlane.f32.xlu1 %v1378_v51  ;;  %1376 = vadd.xlane.f32.xlu0 %v1375_v11 }
 0xed0   :  { %1382 = vadd.xlane.f32.xlu0 %v1381_v14  ;;  %v2129_v14 = vld [vmem:[%s2812_s4 + $0xd8] ss:$12 sps:$4 sm:$0xff]  }
 0xf49   :  { %v1360_v21 = vpop.xlane.xlu0 %1359 }
 0xf4a   :  { %v1366_v39 = vmul.f32 0.03125, %v1360_v21 }
 0xf4c   :  { %v1390_v44 = vmul.f32 %v1366_v39, %v1366_v39  ;;  %v1398_v58 = vsub.f32 %v2664_v5, %v1366_v39 }
 0xf4d   :  { %v1374_v27 = vpop.xlane.xlu1 %1373  ;;  %v1354_v30 = vpop.xlane.xlu0 %1353 }
 0xf4e   :  { %v1364_v34 = vmul.f32 0.03125, %v1354_v30  ;;  %v1384_v35 = vmul.f32 0.03125, %v1374_v27 }
 0xf50   :  { %v1388_v12 = vmul.f32 %v1364_v34, %v1364_v34  ;;  %v1396_v36 = vsub.f32 %v2667_v2, %v1364_v34 }
 0xf51   :  { %v1357_v40 = vpop.xlane.xlu1 %1356  ;;  %v1363_v13 = vpop.xlane.xlu0 %1362 }
 0xf52   :  { %v1392_v10 = vsub.f32 %v1384_v35, %v1388_v12  ;;  %v1365_v42 = vmul.f32 0.03125, %v1357_v40  ;;  %v1367_v46 = vmul.f32 0.03125, %v1363_v13 }
 0xf54   :  { %v1400_v3 = vadd.f32 1e-12, %v1392_v10  ;;  %v1389_v45 = vmul.f32 %v1365_v42, %v1365_v42  ;;  %v1391_v60 = vmul.f32 %v1367_v46, %v1367_v46  ;;  %v1397_v41 = vsub.f32 %v2677_v28, %v1365_v42 }
 0xf55   :  { %v1380_v7 = vpop.xlane.xlu1 %1379  ;;  %v1377_v54 = vpop.xlane.xlu0 %1376  ;;  %v1399_v2 = vsub.f32 %v2674_v8, %v1367_v46  ;;  %v2127_v8 = vld [vmem:[%s2812_s4 + $0x108] ss:$12 sps:$4 sm:$0xff]  }
 0xf56   :  { %v1386_v47 = vmul.f32 0.03125, %v1380_v7  ;;  %v1385_v50 = vmul.f32 0.03125, %v1377_v54  ;;  %2189 = vrsqrt.f32 %v1400_v3  ;;  %2068 = vmatprep.subr.bf16.mxu1 %v2127_v8 }
 0xf57   :  { %2069 = vmatpush3.bf16.msra.mxu1 %v2127_v8 }
 0xf58   :  { %v1394_v53 = vsub.f32 %v1386_v47, %v1390_v44  ;;  %v1393_v56 = vsub.f32 %v1385_v50, %v1389_v45  ;;  %2070 = vmatprep.subr.bf16.mxu1 %v2128_v62 }
 0xf59   :  { %v1383_v57 = vpop.xlane.xlu0 %1382 }
 0xf5a   :  { %v1402_v38 = vadd.f32 1e-12, %v1394_v53  ;;  %v1401_v61 = vadd.f32 1e-12, %v1393_v56  ;;  %v1387_v32 = vmul.f32 0.03125, %v1383_v57 }
 0xf5b   :  { %2071 = vmatpush3.bf16.msra.mxu1 %v2128_v62 }
 0xf5c   :  { %2191 = vrsqrt.f32 %v1402_v38  ;;  %v1395_v63 = vsub.f32 %v1387_v32, %v1391_v60  ;;  %2072 = vmatprep.subr.bf16.mxu1 %v2129_v14 }
 0xf5d   :  { %2193 = vrsqrt.f32 %v1401_v61 }
 0xf5e   :  { %v1403_v19 = vadd.f32 1e-12, %v1395_v63 }
 0xf5f   :  { %2073 = vmatpush3.bf16.msra.mxu1 %v2129_v14 }
 0xf60   :  { %2195 = vrsqrt.f32 %v1403_v19  ;;  %2074 = vmatprep.subr.bf16.mxu1 %v2130_v16 }
 0xf63   :  { %v2190_v25 = vpop.eup %2189  ;;  %2075 = vmatpush3.bf16.msra.mxu1 %v2130_v16 }
 0xf64   :  { %v1408_v1 = vmul.f32 %v2190_v25, %v1396_v36 }
 0xf66   :  { %v1416_v48 = vmul.f32 %v1415_v17, %v1408_v1 }
 0xf68   :  { %v2711_v29 = vadd.f32 %v1423_v4, %v1416_v48 }
 0xf69   :  { %v2192_v43 = vpop.eup %2191 }
 0xf6a   :  { %v2194_v15 = vpop.eup %2193  ;;  %v1410_v18 = vmul.f32 %v2192_v43, %v1398_v58 }
 0xf6b   :  { %v1409_v0 = vmul.f32 %v2194_v15, %v1397_v41 }
 0xf6c   :  { %v1418_v52 = vmul.f32 %v1415_v17, %v1410_v18 }
 0xf6d   :  { %v2196_v6 = vpop.eup %2195  ;;  %v1417_v49 = vmul.f32 %v1415_v17, %v1409_v0 }
 0xf6e   :  { %v1411_v55 = vmul.f32 %v2196_v6, %v1399_v2  ;;  %v2717_v51 = vadd.f32 %v1423_v4, %v1418_v52 }
 0xf6f   :  { %v2713_v5 = vadd.f32 %v1423_v4, %v1417_v49 }
 0xf70   :  { %v1419_v31 = vmul.f32 %v1415_v17, %v1411_v55 }
 0xf71   :  { %v1428_v28 = vpack.c.bf16 %v2713_v5, %v2711_v29 }
 0xf72   :  { %v2719_v11 = vadd.f32 %v1423_v4, %v1419_v31  ;;  %v1542_v31 = vrot.slane %v2626_v37, %v691_v26 }
 0xf73   :  { %2064 = vmatprep.mubr.msk.bf16.mxu0 %vm198_vm1, %v1428_v28 }
 0xf74   :  { %v1429_v59 = vpack.c.bf16 %v2719_v11, %v2717_v51 }
 0xf76   :  { %2065 = vmatmul.mubr.msk.bf16.vlgmr.msra.gmra.mxu0 %vm198_vm1, %v1429_v59 }
0x1036   :  { %v2066_v21 = vpop.f32.mrf.mxu0 }
0x1037   :  { %v1495_v27 = vadd.f32 %v2066_v21, %v1433_v20 }
0x1038   :  { %v1486_v30 = vpop.f32.mrf.mxu0 }
0x1039   :  { %v1503_v34 = vmul.f32 %v1495_v27, %v1495_v27  ;;  %v1487_v35 = vadd.f32 %v1486_v30, %v1433_v20 }
0x103a   :  { %v2067_v12 = vpop.f32.mrf.mxu0 }
0x103b   :  { %v1507_v39 = vmul.f32 %v1503_v34, %v1495_v27  ;;  %v1501_v40 = vmul.f32 %v1487_v35, %v1487_v35  ;;  %v1498_v13 = vadd.f32 %v2067_v12, %v1433_v20 }
0x103c   :  { %v1489_v10 = vpop.f32.mrf.mxu0 }
0x103d   :  { %v1511_v42 = vmul.f32 0.044715, %v1507_v39  ;;  %v1505_v3 = vmul.f32 %v1501_v40, %v1487_v35  ;;  %v1504_v44 = vmul.f32 %v1498_v13, %v1498_v13  ;;  %v1490_v7 = vadd.f32 %v1489_v10, %v1433_v20 }
0x103f   :  { %v1515_v54 = vadd.f32 %v1511_v42, %v1495_v27  ;;  %v1509_v45 = vmul.f32 0.044715, %v1505_v3  ;;  %v1508_v46 = vmul.f32 %v1504_v44, %v1498_v13  ;;  %v1502_v47 = vmul.f32 %v1490_v7, %v1490_v7  ;;  %v2131_v44 = vld [vmem:[%s2812_s4 + $0xac] ss:$12 sps:$4 sm:$0xff]  }
0x1040   :  { %2080 = vmatprep.subr.bf16.mxu0 %v2131_v44 }
0x1041   :  { %v1519_v50 = vmul.f32 0.7978846, %v1515_v54  ;;  %v1513_v22 = vadd.f32 %v1509_v45, %v1487_v35  ;;  %v1512_v53 = vmul.f32 0.044715, %v1508_v46  ;;  %v1506_v56 = vmul.f32 %v1502_v47, %v1490_v7  ;;  %2081 = vmatpush3.bf16.msra.mxu0 %v2131_v44 }
0x1043   :  { %v1517_v57 = vmul.f32 0.7978846, %v1513_v22  ;;  %v1516_v60 = vadd.f32 %v1512_v53, %v1498_v13  ;;  %v1510_v38 = vmul.f32 0.044715, %v1506_v56  ;;  %2197 = vtanh.f32 %v1519_v50 }
0x1045   :  { %2199 = vtanh.f32 %v1517_v57  ;;  %v1520_v61 = vmul.f32 0.7978846, %v1516_v60  ;;  %v1514_v32 = vadd.f32 %v1510_v38, %v1490_v7 }
0x1047   :  { %2201 = vtanh.f32 %v1520_v61  ;;  %v1518_v63 = vmul.f32 0.7978846, %v1514_v32 }
0x1049   :  { %2203 = vtanh.f32 %v1518_v63 }
0x1050   :  { %v2198_v19 = vpop.eup %2197 }
0x1051   :  { %v1527_v1 = vadd.f32 1.0, %v2198_v19 }
0x1052   :  { %v2200_v25 = vpop.eup %2199 }
0x1053   :  { %v1525_v36 = vadd.f32 1.0, %v2200_v25  ;;  %v1531_v4 = vmul.f32 0.5, %v1527_v1 }
0x1054   :  { %v2202_v17 = vpop.eup %2201 }
0x1055   :  { %v1528_v58 = vadd.f32 1.0, %v2202_v17  ;;  %v1529_v41 = vmul.f32 0.5, %v1525_v36  ;;  %v1535_v49 = vmul.f32 %v1531_v4, %v1495_v27 }
0x1056   :  { %v2204_v43 = vpop.eup %2203 }
0x1057   :  { %v1532_v15 = vmul.f32 0.5, %v1528_v58  ;;  %v1526_v18 = vadd.f32 1.0, %v2204_v43  ;;  %v1533_v2 = vmul.f32 %v1529_v41, %v1487_v35 }
0x1059   :  { %v1530_v48 = vmul.f32 0.5, %v1526_v18  ;;  %v1536_v0 = vmul.f32 %v1532_v15, %v1498_v13 }
0x105b   :  { %v1534_v6 = vmul.f32 %v1530_v48, %v1490_v7  ;;  %v1538_v52 = vpack.c.bf16 %v1536_v0, %v1535_v49  ;;  %v2132_v7 = vld [vmem:[%s2812_s4 + $0x94] ss:$12 sps:$4 sm:$0xff]  }
0x105c   :  { %2082 = vmatprep.subr.bf16.mxu0 %v2132_v7 }
0x105d   :  { %v1537_v55 = vpack.c.bf16 %v1534_v6, %v1533_v2  ;;  %2083 = vmatpush3.bf16.msra.mxu0 %v2132_v7 }
0x105f   :  { %2076 = vmatprep.mubr.msk.bf16.mxu1 %vm124_vm0, %v1537_v55 }
0x1060   :  { %2077 = vmatmul.mubr.msk.bf16.vlgmr.msra.gmra.mxu1 %vm124_vm0, %v1538_v52  ;;  %v1689_v52 = vrot.slane %v2626_v37, %v838_v33 }
0x1120   :  { %v2078_v28 = vpop.f32.mrf.mxu1 }
0x1121   :  { %v1616_v59 = vadd.f32 %v2078_v28, %v1542_v31 }
0x1122   :  { %v1607_v8 = vpop.f32.mrf.mxu1 }
0x1123   :  { %v2746_v62 = vadd.f32 %v1616_v59, %v2717_v51  ;;  %v1608_v14 = vadd.f32 %v1607_v8, %v1542_v31 }
0x1124   :  { %v2079_v16 = vpop.f32.mrf.mxu1 }
0x1125   :  { %v2749_v20 = vadd.f32 %v1608_v14, %v2711_v29  ;;  %v1619_v21 = vadd.f32 %v2079_v16, %v1542_v31  ;;  %v1632_v27 = vsel %vm198_vm1, %v2746_v62, 0.0  ;;  %v1644_v40 = vmul.f32 %v2746_v62, %v2746_v62 }
0x1126   :  { %1633 = vadd.xlane.f32.xlu1 %v1632_v27  ;;  %v1610_v30 = vpop.f32.mrf.mxu1 }
0x1127   :  { %v2754_v34 = vadd.f32 %v1619_v21, %v2719_v11  ;;  %v1611_v26 = vadd.f32 %v1610_v30, %v1542_v31  ;;  %v1626_v29 = vsel %vm198_vm1, %v2749_v20, 0.0  ;;  %v1642_v12 = vmul.f32 %v2749_v20, %v2749_v20 }
0x1128   :  { %v1652_v10 = vsel %vm198_vm1, %v1644_v40, 0.0  ;;  %v1697_v21 = vrot.slane %v2626_v37, %v846_v9  ;;  %v1707_v9 = vrot.slane %v944_v23, %v2362_v24 }
0x1129   :  { %v2757_v35 = vadd.f32 %v1611_v26, %v2713_v5  ;;  %v1635_v51 = vsel %vm198_vm1, %v2754_v34, 0.0  ;;  %v1646_v11 = vsel %vm198_vm1, %v1642_v12, 0.0  ;;  %v1645_v42 = vmul.f32 %v2754_v34, %v2754_v34 }
0x112a   :  { %1636 = vadd.xlane.f32.xlu0 %v1635_v51  ;;  %1627 = vadd.xlane.f32.xlu1 %v1626_v29 }
0x112b   :  { %v1629_v39 = vsel %vm198_vm1, %v2757_v35, 0.0  ;;  %v1643_v5 = vmul.f32 %v2757_v35, %v2757_v35  ;;  %v1655_v3 = vsel %vm198_vm1, %v1645_v42, 0.0 }
0x112d   :  { %v1649_v13 = vsel %vm198_vm1, %v1643_v5, 0.0 }
0x112e   :  { %1630 = vadd.xlane.f32.xlu0 %v1629_v39  ;;  %1647 = vadd.xlane.f32.xlu1 %v1646_v11 }
0x1132   :  { %1650 = vadd.xlane.f32.xlu0 %v1649_v13  ;;  %1653 = vadd.xlane.f32.xlu1 %v1652_v10 }
0x1136   :  { %1656 = vadd.xlane.f32.xlu0 %v1655_v3 }
0x11af   :  { %v1634_v54 = vpop.xlane.xlu1 %1633 }
0x11b0   :  { %v1640_v50 = vmul.f32 0.03125, %v1634_v54 }
0x11b2   :  { %v1664_v61 = vmul.f32 %v1640_v50, %v1640_v50  ;;  %v1672_v59 = vsub.f32 %v2746_v62, %v1640_v50 }
0x11b3   :  { %v1637_v45 = vpop.xlane.xlu0 %1636  ;;  %v1628_v46 = vpop.xlane.xlu1 %1627 }
0x11b4   :  { %v1638_v47 = vmul.f32 0.03125, %v1628_v46  ;;  %v1641_v32 = vmul.f32 0.03125, %v1637_v45 }
0x11b6   :  { %v1662_v56 = vmul.f32 %v1638_v47, %v1638_v47  ;;  %v1665_v15 = vmul.f32 %v1641_v32, %v1641_v32  ;;  %v1670_v6 = vsub.f32 %v2749_v20, %v1638_v47  ;;  %v1673_v20 = vsub.f32 %v2754_v34, %v1641_v32 }
0x11b7   :  { %v1631_v22 = vpop.xlane.xlu0 %1630  ;;  %v1648_v53 = vpop.xlane.xlu1 %1647 }
0x11b8   :  { %v1639_v57 = vmul.f32 0.03125, %v1631_v22  ;;  %v1658_v60 = vmul.f32 0.03125, %v1648_v53 }
0x11ba   :  { %v1666_v38 = vsub.f32 %v1658_v60, %v1662_v56  ;;  %v1663_v25 = vmul.f32 %v1639_v57, %v1639_v57  ;;  %v1671_v31 = vsub.f32 %v2757_v35, %v1639_v57 }
0x11bb   :  { %v1651_v63 = vpop.xlane.xlu0 %1650  ;;  %v1654_v19 = vpop.xlane.xlu1 %1653 }
0x11bc   :  { %v1674_v36 = vadd.f32 1e-12, %v1666_v38  ;;  %v1659_v17 = vmul.f32 0.03125, %v1651_v63  ;;  %v1660_v1 = vmul.f32 0.03125, %v1654_v19 }
0x11be   :  { %2205 = vrsqrt.f32 %v1674_v36  ;;  %v1667_v58 = vsub.f32 %v1659_v17, %v1663_v25  ;;  %v1668_v43 = vsub.f32 %v1660_v1, %v1664_v61 }
0x11bf   :  { %v1657_v41 = vpop.xlane.xlu0 %1656 }
0x11c0   :  { %v1675_v18 = vadd.f32 1e-12, %v1667_v58  ;;  %v1676_v4 = vadd.f32 1e-12, %v1668_v43  ;;  %v1661_v48 = vmul.f32 0.03125, %v1657_v41 }
0x11c2   :  { %2207 = vrsqrt.f32 %v1675_v18  ;;  %v1669_v0 = vsub.f32 %v1661_v48, %v1665_v15 }
0x11c3   :  { %2209 = vrsqrt.f32 %v1676_v4 }
0x11c4   :  { %v1677_v2 = vadd.f32 1e-12, %v1669_v0 }
0x11c6   :  { %2211 = vrsqrt.f32 %v1677_v2 }
0x11cb   :  { %v2206_v49 = vpop.eup %2205 }
0x11cc   :  { %v1682_v55 = vmul.f32 %v2206_v49, %v1670_v6 }
0x11ce   :  { %v1690_v16 = vmul.f32 %v1689_v52, %v1682_v55 }
0x11cf   :  { %v2208_v28 = vpop.eup %2207 }
0x11d0   :  { %v2210_v8 = vpop.eup %2209  ;;  %v1683_v14 = vmul.f32 %v2208_v28, %v1671_v31  ;;  %v1698_v29 = vadd.f32 %v1697_v21, %v1690_v16 }
0x11d1   :  { %v1684_v27 = vmul.f32 %v2210_v8, %v1672_v59 }
0x11d2   :  { %v1691_v30 = vmul.f32 %v1689_v52, %v1683_v14 }
0x11d3   :  { %v2212_v26 = vpop.eup %2211  ;;  %v1692_v12 = vmul.f32 %v1689_v52, %v1684_v27 }
0x11d4   :  { %v1685_v51 = vmul.f32 %v2212_v26, %v1673_v20  ;;  %v1699_v33 = vadd.f32 %v1697_v21, %v1691_v30 }
0x11d5   :  { %v1700_v62 = vadd.f32 %v1697_v21, %v1692_v12 }
0x11d6   :  { %v1702_v35 = vpack.c.bf16 %v1699_v33, %v1698_v29  ;;  %v1693_v39 = vmul.f32 %v1689_v52, %v1685_v51 }
0x11d8   :  { %2084 = vmatprep.mubr.msk.bf16.mxu0 %vm198_vm1, %v1702_v35  ;;  %v1701_v11 = vadd.f32 %v1697_v21, %v1693_v39 }
0x11da   :  { %v1703_v5 = vpack.c.bf16 %v1701_v11, %v1700_v62 }
0x11dc   :  { %2085 = vmatmul.mubr.msk.bf16.vlgmr.msra.gmra.mxu0 %vm198_vm1, %v1703_v5 }
0x129c   :  { %v2086_v37 = vpop.f32.mrf.mxu0 }
0x129d   :  { %v1765_v34 = vadd.f32 %v2086_v37, %v1707_v9 }
0x129e   :  { %v1756_v40 = vpop.f32.mrf.mxu0 }
0x129f   :  { %1870 = vst [vmem:[%s2814_s6 + $0x30] sm:$0xff] %v1765_v34  ;;  %v1757_v13 = vadd.f32 %v1756_v40, %v1707_v9 }
0x12a0   :  { %v2087_v10 = vpop.f32.mrf.mxu0 }
0x12a1   :  { %1868 = vst [vmem:[%s2814_s6 + $0x20] sm:$0xff] %v1757_v13  ;;  %v1768_v42 = vadd.f32 %v2087_v10, %v1707_v9 }
0x12a2   :  { %v1759_v3 = vpop.f32.mrf.mxu0 }
0x12a3   :  { %1871 = vst [vmem:[%s2814_s6 + $0x38] sm:$0xff] %v1768_v42  ;;  %v1760_v24 = vadd.f32 %v1759_v3, %v1707_v9 }
0x12a5   :  { %1869 = vst [vmem:[%s2814_s6 + $0x28] sm:$0xff] %v1760_v24 }
0x12a6   :  { %1780 = vsyncpa [#allocation3], 1 }
0x12a7   :  { %1781 = vsyncpa [#allocation5], 1 }

</bundles_post_ra>
